<compile_context>
chip_gen: v7x
topology: tpu7x:2x2x1
jax: 0.10.0
libtpu: 0.0.40
codegen_flags: <defaults>
</compile_context>

<pallas_src>
import functools

import jax
import jax.numpy as jnp
from jax.experimental import pallas as pl
from jax.experimental.pallas import tpu as pltpu

C_PAD = 128   # lane-dense channel width
TOP = 8       # sublane-aligned top-halo rows in the activation buffer


def _round_up(v, m):
    return (v + m - 1) // m * m


def _fused_tcn_kernel(x_ref, w_ref, b_ref, sc_ref, sh_ref, o_ref, buf_ref, *,
                      K, L, SEG, TAIL, B_TILE, n_stages, L_out):
    # x_ref:   (B_TILE, L, C)             channel-padded inputs for this grid step
    # w_ref:   (n_stages, K, C, C) bf16   per-stage, per-tap conv weights
    # b_ref:   (n_stages, 1, C)           conv bias (0 on padded channels)
    # sc_ref:  (n_stages, 1, C)           gamma / sqrt(running_var + eps)
    # sh_ref:  (n_stages, 1, C)           beta - running_mean * scale
    # o_ref:   (B_TILE, L_out, C)
    # buf_ref: (TOP + B_TILE*SEG + TAIL, C) f32  zero-haloed stacked activations
    C = buf_ref.shape[-1]
    left = (K - 1) // 2
    M = B_TILE * SEG
    gap = SEG - L

    # ---- once per grid step: zero only halo/gap/tail rows, place the inputs ----
    buf_ref[pl.ds(0, TOP), :] = jnp.zeros((TOP, C), jnp.float32)
    for e in range(B_TILE):
        buf_ref[pl.ds(TOP + e * SEG, L), :] = x_ref[e]
        if gap > 0:
            buf_ref[pl.ds(TOP + e * SEG + L, gap), :] = jnp.zeros((gap, C),
                                                                  jnp.float32)
    buf_ref[pl.ds(TOP + M, TAIL), :] = jnp.zeros((TAIL, C), jnp.float32)

    # Row position inside each batch segment (static layout -> cheap iota mask).
    local_pos = jax.lax.broadcasted_iota(jnp.int32, (B_TILE, SEG, C),
                                         1).reshape(M, C)

    cur_len = L
    for s in range(n_stages):                 # static unroll over the 4 stages
        # Conv1d('same'): K accumulated shifted matmuls, bf16 inputs / f32 acc.
        acc = jnp.zeros((M + 2, C), jnp.float32)
        for k in range(K):
            lhs = buf_ref[pl.ds(TOP - left + k, M + 2), :].astype(jnp.bfloat16)
            acc = acc + jnp.dot(lhs, w_ref[s, k],
                                preferred_element_type=jnp.float32)
        y = jnp.maximum(acc + b_ref[s], 0.0)                      # bias + ReLU
        # MaxPool1d(3, 1): valid rows never read across a segment gap.
        p = jnp.maximum(jnp.maximum(y[0:M, :], y[1:M + 1, :]), y[2:M + 2, :])
        h = p * sc_ref[s] + sh_ref[s]          # folded BatchNorm1d (eval mode)
        cur_len -= 2
        if s < n_stages - 1:
            # Next stage's input written straight back into buf (aligned vst);
            # gap rows forced to 0 so they keep acting as the 'same' halo.
            buf_ref[pl.ds(TOP, M), :] = jnp.where(local_pos < cur_len, h, 0.0)
        else:
            for e in range(B_TILE):
                o_ref[e] = h[e * SEG:e * SEG + L_out, :].astype(o_ref.dtype)


def single_stage_tcn(x_ncl, packed, temp_window, *, target_m=256):
    """x_ncl: PyTorch layout (N, C_in, L). Returns (N, embed_dim, L - 2*n_stages)."""
    w_all, b_all, sc_all, sh_all, out_dim = packed
    N, C_in, L = x_ncl.shape
    n_stages = w_all.shape[0]
    K = temp_window
    left = (K - 1) // 2
    right = K - 1 - left
    L_out = L - 2 * n_stages
    assert L_out >= 1 and C_in <= C_PAD and left <= TOP

    # One zero-gapped segment of SEG rows per batch element in the stacked buffer.
    SEG = _round_up(L + max(left, right, 1), 8)
    TAIL = _round_up(right + 2, 8)

    # Batch tile: aim the matmul M-dim (= B_TILE*SEG) near target_m, but keep
    # >= 2 grid steps when N allows (rounded up to an even count) so both v7x
    # TensorCores get work under "parallel" grid semantics.
    b_tile = max(1, min(N, target_m // SEG))
    if N >= 2:
        b_tile = max(1, min(b_tile, pl.cdiv(N, 2)))
    grid_n = pl.cdiv(N, b_tile)
    if grid_n > 1 and grid_n % 2 == 1:
        grid_n += 1
    n_pad = grid_n * b_tile

    # NCL -> NLC (channels on lanes), single batch/channel zero pad.
    # TODO(synk): if the surrounding model consumes channel-last activations,
    # this transpose and the final one can be dropped (extra HBM passes).
    x_nlc = jnp.transpose(x_ncl, (0, 2, 1))
    x_p = jnp.pad(x_nlc, ((0, n_pad - N), (0, 0), (0, C_PAD - C_in)))

    kernel = functools.partial(
        _fused_tcn_kernel, K=K, L=L, SEG=SEG, TAIL=TAIL, B_TILE=b_tile,
        n_stages=n_stages, L_out=L_out)
    out_p = pl.pallas_call(
        kernel,
        out_shape=jax.ShapeDtypeStruct((n_pad, L_out, C_PAD), jnp.float32),
        grid=(grid_n,),
        in_specs=[
            pl.BlockSpec((b_tile, L, C_PAD), lambda n: (n, 0, 0)),
            pl.BlockSpec((n_stages, K, C_PAD, C_PAD), lambda n: (0, 0, 0, 0)),
            pl.BlockSpec((n_stages, 1, C_PAD), lambda n: (0, 0, 0)),
            pl.BlockSpec((n_stages, 1, C_PAD), lambda n: (0, 0, 0)),
            pl.BlockSpec((n_stages, 1, C_PAD), lambda n: (0, 0, 0)),
        ],
        out_specs=pl.BlockSpec((b_tile, L_out, C_PAD), lambda n: (n, 0, 0)),
        scratch_shapes=[
            pltpu.VMEM((TOP + b_tile * SEG + TAIL, C_PAD), jnp.float32),
        ],
        compiler_params=pltpu.CompilerParams(
            dimension_semantics=("parallel",)),
    )(x_p, w_all, b_all, sc_all, sh_all)

    # Drop the batch/channel padding and return to PyTorch NCL layout.
    return jnp.transpose(out_p[:N, :, :out_dim], (0, 2, 1))


def make_params(key, ftrs_embed, embed_dim, temp_window):
    """Deterministic synthetic PyTorch-layout params with BN folded to scale/shift."""
    dims = [ftrs_embed, 64, 32, 16, embed_dim]
    eps = 1e-5
    params = []
    keys = jax.random.split(key, 4 * 6)
    ki = 0
    for i in range(4):
        c_in, c_out = dims[i], dims[i + 1]
        w = 0.1 * jax.random.normal(keys[ki], (c_out, c_in, temp_window), jnp.float32); ki += 1
        b = 0.1 * jax.random.normal(keys[ki], (c_out,), jnp.float32); ki += 1
        gamma = 1.0 + 0.1 * jax.random.normal(keys[ki], (c_out,), jnp.float32); ki += 1
        beta = 0.1 * jax.random.normal(keys[ki], (c_out,), jnp.float32); ki += 1
        rmean = 0.1 * jax.random.normal(keys[ki], (c_out,), jnp.float32); ki += 1
        rvar = jax.random.uniform(keys[ki], (c_out,), jnp.float32, 0.5, 1.5); ki += 1
        scale = gamma / jnp.sqrt(rvar + eps)
        shift = beta - rmean * scale
        params.append(dict(w=w, b=b, scale=scale, shift=shift))
    return params


def pack_params(params, temp_window):
    """Pack per-stage params into lane-dense (128-channel-padded) kernel tensors."""
    n_stages = len(params)
    K = temp_window
    w_all = jnp.zeros((n_stages, K, C_PAD, C_PAD), jnp.float32)
    b_all = jnp.zeros((n_stages, 1, C_PAD), jnp.float32)
    sc_all = jnp.zeros((n_stages, 1, C_PAD), jnp.float32)
    sh_all = jnp.zeros((n_stages, 1, C_PAD), jnp.float32)
    for s, p in enumerate(params):
        c_out, c_in, _ = p["w"].shape
        w_kio = jnp.transpose(p["w"], (2, 1, 0))         # (K, C_in, C_out)
        w_all = w_all.at[s, :, :c_in, :c_out].set(w_kio)
        b_all = b_all.at[s, 0, :c_out].set(p["b"])
        sc_all = sc_all.at[s, 0, :c_out].set(p["scale"])
        sh_all = sh_all.at[s, 0, :c_out].set(p["shift"])
    out_dim = params[-1]["w"].shape[0]
    # bf16 weights: MXU runs at bf16 rate on v6e/v7x, f32 accumulation in-kernel.
    return w_all.astype(jnp.bfloat16), b_all, sc_all, sh_all, out_dim


def reference_tcn(x_ncl, params, temp_window):
    """Pure-JAX f32 reference of the eval-mode forward pass (PyTorch layouts)."""
    K = temp_window
    left = (K - 1) // 2
    right = (K - 1) - left
    h = x_ncl
    for p in params:
        w, b, scale, shift = p["w"], p["b"], p["scale"], p["shift"]
        L_cur = h.shape[-1]
        hp = jnp.pad(h, ((0, 0), (0, 0), (left, right)))
        y = jnp.zeros((h.shape[0], w.shape[0], L_cur), jnp.float32) + b[None, :, None]
        for k in range(K):
            y = y + jnp.einsum("ncl,oc->nol", hp[:, :, k:k + L_cur], w[:, :, k])
        y = jnp.maximum(y, 0.0)
        y = jnp.maximum(jnp.maximum(y[:, :, 0:L_cur - 2], y[:, :, 1:L_cur - 1]),
                        y[:, :, 2:L_cur])
        h = y * scale[None, :, None] + shift[None, :, None]
    return h


if __name__ == "__main__":
    key = jax.random.PRNGKey(0)
    k_param, k_x = jax.random.split(key)

    N, ftrs_embed, L = 2, 8, 16
    embed_dim, temp_window = 8, 3

    params = make_params(k_param, ftrs_embed, embed_dim, temp_window)
    packed = pack_params(params, temp_window)
    x = jax.random.normal(k_x, (N, ftrs_embed, L), jnp.float32)  # PyTorch NCL layout

    # TODO(synk): training-mode BatchNorm (batch statistics) and stochastic Dropout
    # are not implemented; eval-mode (deterministic) semantics are used.
    out = single_stage_tcn(x, packed, temp_window)
    jax.block_until_ready(out)
    assert out.shape == (N, embed_dim, L - 8), out.shape

    ref = reference_tcn(x, params, temp_window)
    max_err = float(jnp.max(jnp.abs(out - ref)))
    # bf16 matmul operands with f32 accumulation -> slightly looser tolerance.
    assert max_err < 5e-2, f"kernel vs reference mismatch: max abs err {max_err}"

    print("KERNEL_OK")
</pallas_src>

<mosaic_0001>
module attributes {stable_mosaic.version = 11 : i64} {
  func.func @_fused_tcn_kernel(%arg0: i32, %arg1: memref<1x16x128xf32, #tpu.memory_space<vmem>>, %arg2: memref<4x3x128x128xbf16, #tpu.memory_space<vmem>>, %arg3: memref<4x1x128xf32, #tpu.memory_space<vmem>>, %arg4: memref<4x1x128xf32, #tpu.memory_space<vmem>>, %arg5: memref<4x1x128xf32, #tpu.memory_space<vmem>>, %arg6: memref<1x8x128xf32, #tpu.memory_space<vmem>>, %arg7: memref<40x128xf32, #tpu.memory_space<vmem>>) attributes {dimension_semantics = [#tpu.dimension_semantics<parallel>], iteration_bounds = array<i64: 2>, scalar_prefetch = 0 : i64, scratch_operands = 1 : i64, tpu.core_type = #tpu.core_type<tc>, window_params = [{transform_indices = @transform_0, window_bounds = array<i64: 1, 16, 128>}, {pipeline_mode = #tpu.pipeline_mode<synchronous>, transform_indices = @transform_1, window_bounds = array<i64: 4, 3, 128, 128>}, {pipeline_mode = #tpu.pipeline_mode<synchronous>, transform_indices = @transform_2, window_bounds = array<i64: 4, 1, 128>}, {pipeline_mode = #tpu.pipeline_mode<synchronous>, transform_indices = @transform_3, window_bounds = array<i64: 4, 1, 128>}, {pipeline_mode = #tpu.pipeline_mode<synchronous>, transform_indices = @transform_4, window_bounds = array<i64: 4, 1, 128>}, {transform_indices = @transform_5, window_bounds = array<i64: 1, 8, 128>}]} {
    %cst = arith.constant 0.000000e+00 : f32
    %0 = vector.broadcast %cst : f32 to vector<8x128xf32>
    %c0 = arith.constant 0 : index
    %c0_0 = arith.constant 0 : index
    %1 = vector.load %arg7[%c0, %c0_0] : memref<40x128xf32, #tpu.memory_space<vmem>>, vector<8x128xf32>
    tpu.vector_store %arg7[%c0, %c0_0], %0 {strides = array<i32>} : memref<40x128xf32, #tpu.memory_space<vmem>>, vector<8x128xf32>,
    %c0_1 = arith.constant 0 : index
    %c0_2 = arith.constant 0 : index
    %c0_3 = arith.constant 0 : index
    %2 = vector.load %arg1[%c0_1, %c0_2, %c0_3] : memref<1x16x128xf32, #tpu.memory_space<vmem>>, vector<1x16x128xf32>
    %3 = vector.shape_cast %2 : vector<1x16x128xf32> to vector<16x128xf32>
    %c8 = arith.constant 8 : index
    %c0_4 = arith.constant 0 : index
    %4 = vector.load %arg7[%c8, %c0_4] : memref<40x128xf32, #tpu.memory_space<vmem>>, vector<16x128xf32>
    tpu.vector_store %arg7[%c8, %c0_4], %3 {strides = array<i32>} : memref<40x128xf32, #tpu.memory_space<vmem>>, vector<16x128xf32>,
    %cst_5 = arith.constant 0.000000e+00 : f32
    %5 = vector.broadcast %cst_5 : f32 to vector<8x128xf32>
    %c24 = arith.constant 24 : index
    %c0_6 = arith.constant 0 : index
    %6 = vector.load %arg7[%c24, %c0_6] : memref<40x128xf32, #tpu.memory_space<vmem>>, vector<8x128xf32>
    tpu.vector_store %arg7[%c24, %c0_6], %5 {strides = array<i32>} : memref<40x128xf32, #tpu.memory_space<vmem>>, vector<8x128xf32>,
    %cst_7 = arith.constant 0.000000e+00 : f32
    %7 = vector.broadcast %cst_7 : f32 to vector<8x128xf32>
    %c32 = arith.constant 32 : index
    %c0_8 = arith.constant 0 : index
    %8 = vector.load %arg7[%c32, %c0_8] : memref<40x128xf32, #tpu.memory_space<vmem>>, vector<8x128xf32>
    tpu.vector_store %arg7[%c32, %c0_8], %7 {strides = array<i32>} : memref<40x128xf32, #tpu.memory_space<vmem>>, vector<8x128xf32>,
    %9 = tpu.iota {dimensions = array<i32: 1>} : vector<1x24x128xi32>
    %10 = vector.shape_cast %9 : vector<1x24x128xi32> to vector<24x128xi32>
    %cst_9 = arith.constant 0.000000e+00 : f32
    %11 = vector.broadcast %cst_9 : f32 to vector<26x128xf32>
    %c7 = arith.constant 7 : index
    %c0_10 = arith.constant 0 : index
    %12 = vector.load %arg7[%c7, %c0_10] : memref<40x128xf32, #tpu.memory_space<vmem>>, vector<26x128xf32>
    %13 = arith.truncf %12 : vector<26x128xf32> to vector<26x128xbf16>
    %c0_11 = arith.constant 0 : index
    %c0_12 = arith.constant 0 : index
    %c0_13 = arith.constant 0 : index
    %c0_14 = arith.constant 0 : index
    %14 = vector.load %arg2[%c0_11, %c0_12, %c0_13, %c0_14] : memref<4x3x128x128xbf16, #tpu.memory_space<vmem>>, vector<1x1x128x128xbf16>
    %15 = vector.shape_cast %14 : vector<1x1x128x128xbf16> to vector<128x128xbf16>
    %cst_15 = arith.constant dense<0.000000e+00> : vector<26x128xf32>
    %16 = tpu.matmul %13, %15, %cst_15 {dimension_numbers = #tpu.dot_dimension_numbers<[1], [0], [0], [1], [0, 0, 1, 1], [], []>} : vector<26x128xbf16>, vector<128x128xbf16>, vector<26x128xf32> -> vector<26x128xf32>
    %17 = arith.addf %11, %16 : vector<26x128xf32>
    %c8_16 = arith.constant 8 : index
    %c0_17 = arith.constant 0 : index
    %18 = vector.load %arg7[%c8_16, %c0_17] : memref<40x128xf32, #tpu.memory_space<vmem>>, vector<26x128xf32>
    %19 = arith.truncf %18 : vector<26x128xf32> to vector<26x128xbf16>
    %c0_18 = arith.constant 0 : index
    %c1 = arith.constant 1 : index
    %c0_19 = arith.constant 0 : index
    %c0_20 = arith.constant 0 : index
    %20 = vector.load %arg2[%c0_18, %c1, %c0_19, %c0_20] : memref<4x3x128x128xbf16, #tpu.memory_space<vmem>>, vector<1x1x128x128xbf16>
    %21 = vector.shape_cast %20 : vector<1x1x128x128xbf16> to vector<128x128xbf16>
    %cst_21 = arith.constant dense<0.000000e+00> : vector<26x128xf32>
    %22 = tpu.matmul %19, %21, %cst_21 {dimension_numbers = #tpu.dot_dimension_numbers<[1], [0], [0], [1], [0, 0, 1, 1], [], []>} : vector<26x128xbf16>, vector<128x128xbf16>, vector<26x128xf32> -> vector<26x128xf32>
    %23 = arith.addf %17, %22 : vector<26x128xf32>
    %c9 = arith.constant 9 : index
    %c0_22 = arith.constant 0 : index
    %24 = vector.load %arg7[%c9, %c0_22] : memref<40x128xf32, #tpu.memory_space<vmem>>, vector<26x128xf32>
    %25 = arith.truncf %24 : vector<26x128xf32> to vector<26x128xbf16>
    %c0_23 = arith.constant 0 : index
    %c2 = arith.constant 2 : index
    %c0_24 = arith.constant 0 : index
    %c0_25 = arith.constant 0 : index
    %26 = vector.load %arg2[%c0_23, %c2, %c0_24, %c0_25] : memref<4x3x128x128xbf16, #tpu.memory_space<vmem>>, vector<1x1x128x128xbf16>
    %27 = vector.shape_cast %26 : vector<1x1x128x128xbf16> to vector<128x128xbf16>
    %cst_26 = arith.constant dense<0.000000e+00> : vector<26x128xf32>
    %28 = tpu.matmul %25, %27, %cst_26 {dimension_numbers = #tpu.dot_dimension_numbers<[1], [0], [0], [1], [0, 0, 1, 1], [], []>} : vector<26x128xbf16>, vector<128x128xbf16>, vector<26x128xf32> -> vector<26x128xf32>
    %29 = arith.addf %23, %28 : vector<26x128xf32>
    %c0_27 = arith.constant 0 : index
    %c0_28 = arith.constant 0 : index
    %c0_29 = arith.constant 0 : index
    %30 = vector.load %arg3[%c0_27, %c0_28, %c0_29] : memref<4x1x128xf32, #tpu.memory_space<vmem>>, vector<1x1x128xf32>
    %31 = vector.shape_cast %30 : vector<1x1x128xf32> to vector<1x128xf32>
    %32 = vector.broadcast %31 : vector<1x128xf32> to vector<26x128xf32>
    %33 = arith.addf %29, %32 : vector<26x128xf32>
    %cst_30 = arith.constant 0.000000e+00 : f32
    %34 = vector.broadcast %cst_30 : f32 to vector<26x128xf32>
    %35 = arith.maximumf %33, %34 : vector<26x128xf32>
    %36 = vector.extract_strided_slice %35 {offsets = [0, 0], sizes = [24, 128], strides = [1, 1]} : vector<26x128xf32> to vector<24x128xf32>
    %37 = vector.extract_strided_slice %35 {offsets = [1, 0], sizes = [24, 128], strides = [1, 1]} : vector<26x128xf32> to vector<24x128xf32>
    %38 = arith.maximumf %36, %37 : vector<24x128xf32>
    %39 = vector.extract_strided_slice %35 {offsets = [2, 0], sizes = [24, 128], strides = [1, 1]} : vector<26x128xf32> to vector<24x128xf32>
    %40 = arith.maximumf %38, %39 : vector<24x128xf32>
    %c0_31 = arith.constant 0 : index
    %c0_32 = arith.constant 0 : index
    %c0_33 = arith.constant 0 : index
    %41 = vector.load %arg4[%c0_31, %c0_32, %c0_33] : memref<4x1x128xf32, #tpu.memory_space<vmem>>, vector<1x1x128xf32>
    %42 = vector.shape_cast %41 : vector<1x1x128xf32> to vector<1x128xf32>
    %43 = vector.broadcast %42 : vector<1x128xf32> to vector<24x128xf32>
    %44 = arith.mulf %40, %43 : vector<24x128xf32>
    %c0_34 = arith.constant 0 : index
    %c0_35 = arith.constant 0 : index
    %c0_36 = arith.constant 0 : index
    %45 = vector.load %arg5[%c0_34, %c0_35, %c0_36] : memref<4x1x128xf32, #tpu.memory_space<vmem>>, vector<1x1x128xf32>
    %46 = vector.shape_cast %45 : vector<1x1x128xf32> to vector<1x128xf32>
    %47 = vector.broadcast %46 : vector<1x128xf32> to vector<24x128xf32>
    %48 = arith.addf %44, %47 : vector<24x128xf32>
    %c14_i32 = arith.constant 14 : i32
    %49 = vector.broadcast %c14_i32 : i32 to vector<24x128xi32>
    %50 = arith.cmpi slt, %10, %49 : vector<24x128xi32>
    %cst_37 = arith.constant 0.000000e+00 : f32
    %51 = vector.broadcast %cst_37 : f32 to vector<24x128xf32>
    %52 = arith.select %50, %48, %51 : vector<24x128xi1>, vector<24x128xf32>
    %c8_38 = arith.constant 8 : index
    %c0_39 = arith.constant 0 : index
    %53 = vector.load %arg7[%c8_38, %c0_39] : memref<40x128xf32, #tpu.memory_space<vmem>>, vector<24x128xf32>
    tpu.vector_store %arg7[%c8_38, %c0_39], %52 {strides = array<i32>} : memref<40x128xf32, #tpu.memory_space<vmem>>, vector<24x128xf32>,
    %cst_40 = arith.constant 0.000000e+00 : f32
    %54 = vector.broadcast %cst_40 : f32 to vector<26x128xf32>
    %c7_41 = arith.constant 7 : index
    %c0_42 = arith.constant 0 : index
    %55 = vector.load %arg7[%c7_41, %c0_42] : memref<40x128xf32, #tpu.memory_space<vmem>>, vector<26x128xf32>
    %56 = arith.truncf %55 : vector<26x128xf32> to vector<26x128xbf16>
    %c1_43 = arith.constant 1 : index
    %c0_44 = arith.constant 0 : index
    %c0_45 = arith.constant 0 : index
    %c0_46 = arith.constant 0 : index
    %57 = vector.load %arg2[%c1_43, %c0_44, %c0_45, %c0_46] : memref<4x3x128x128xbf16, #tpu.memory_space<vmem>>, vector<1x1x128x128xbf16>
    %58 = vector.shape_cast %57 : vector<1x1x128x128xbf16> to vector<128x128xbf16>
    %cst_47 = arith.constant dense<0.000000e+00> : vector<26x128xf32>
    %59 = tpu.matmul %56, %58, %cst_47 {dimension_numbers = #tpu.dot_dimension_numbers<[1], [0], [0], [1], [0, 0, 1, 1], [], []>} : vector<26x128xbf16>, vector<128x128xbf16>, vector<26x128xf32> -> vector<26x128xf32>
    %60 = arith.addf %54, %59 : vector<26x128xf32>
    %c8_48 = arith.constant 8 : index
    %c0_49 = arith.constant 0 : index
    %61 = vector.load %arg7[%c8_48, %c0_49] : memref<40x128xf32, #tpu.memory_space<vmem>>, vector<26x128xf32>
    %62 = arith.truncf %61 : vector<26x128xf32> to vector<26x128xbf16>
    %c1_50 = arith.constant 1 : index
    %c1_51 = arith.constant 1 : index
    %c0_52 = arith.constant 0 : index
    %c0_53 = arith.constant 0 : index
    %63 = vector.load %arg2[%c1_50, %c1_51, %c0_52, %c0_53] : memref<4x3x128x128xbf16, #tpu.memory_space<vmem>>, vector<1x1x128x128xbf16>
    %64 = vector.shape_cast %63 : vector<1x1x128x128xbf16> to vector<128x128xbf16>
    %cst_54 = arith.constant dense<0.000000e+00> : vector<26x128xf32>
    %65 = tpu.matmul %62, %64, %cst_54 {dimension_numbers = #tpu.dot_dimension_numbers<[1], [0], [0], [1], [0, 0, 1, 1], [], []>} : vector<26x128xbf16>, vector<128x128xbf16>, vector<26x128xf32> -> vector<26x128xf32>
    %66 = arith.addf %60, %65 : vector<26x128xf32>
    %c9_55 = arith.constant 9 : index
    %c0_56 = arith.constant 0 : index
    %67 = vector.load %arg7[%c9_55, %c0_56] : memref<40x128xf32, #tpu.memory_space<vmem>>, vector<26x128xf32>
    %68 = arith.truncf %67 : vector<26x128xf32> to vector<26x128xbf16>
    %c1_57 = arith.constant 1 : index
    %c2_58 = arith.constant 2 : index
    %c0_59 = arith.constant 0 : index
    %c0_60 = arith.constant 0 : index
    %69 = vector.load %arg2[%c1_57, %c2_58, %c0_59, %c0_60] : memref<4x3x128x128xbf16, #tpu.memory_space<vmem>>, vector<1x1x128x128xbf16>
    %70 = vector.shape_cast %69 : vector<1x1x128x128xbf16> to vector<128x128xbf16>
    %cst_61 = arith.constant dense<0.000000e+00> : vector<26x128xf32>
    %71 = tpu.matmul %68, %70, %cst_61 {dimension_numbers = #tpu.dot_dimension_numbers<[1], [0], [0], [1], [0, 0, 1, 1], [], []>} : vector<26x128xbf16>, vector<128x128xbf16>, vector<26x128xf32> -> vector<26x128xf32>
    %72 = arith.addf %66, %71 : vector<26x128xf32>
    %c1_62 = arith.constant 1 : index
    %c0_63 = arith.constant 0 : index
    %c0_64 = arith.constant 0 : index
    %73 = vector.load %arg3[%c1_62, %c0_63, %c0_64] : memref<4x1x128xf32, #tpu.memory_space<vmem>>, vector<1x1x128xf32>
    %74 = vector.shape_cast %73 : vector<1x1x128xf32> to vector<1x128xf32>
    %75 = vector.broadcast %74 : vector<1x128xf32> to vector<26x128xf32>
    %76 = arith.addf %72, %75 : vector<26x128xf32>
    %cst_65 = arith.constant 0.000000e+00 : f32
    %77 = vector.broadcast %cst_65 : f32 to vector<26x128xf32>
    %78 = arith.maximumf %76, %77 : vector<26x128xf32>
    %79 = vector.extract_strided_slice %78 {offsets = [0, 0], sizes = [24, 128], strides = [1, 1]} : vector<26x128xf32> to vector<24x128xf32>
    %80 = vector.extract_strided_slice %78 {offsets = [1, 0], sizes = [24, 128], strides = [1, 1]} : vector<26x128xf32> to vector<24x128xf32>
    %81 = arith.maximumf %79, %80 : vector<24x128xf32>
    %82 = vector.extract_strided_slice %78 {offsets = [2, 0], sizes = [24, 128], strides = [1, 1]} : vector<26x128xf32> to vector<24x128xf32>
    %83 = arith.maximumf %81, %82 : vector<24x128xf32>
    %c1_66 = arith.constant 1 : index
    %c0_67 = arith.constant 0 : index
    %c0_68 = arith.constant 0 : index
    %84 = vector.load %arg4[%c1_66, %c0_67, %c0_68] : memref<4x1x128xf32, #tpu.memory_space<vmem>>, vector<1x1x128xf32>
    %85 = vector.shape_cast %84 : vector<1x1x128xf32> to vector<1x128xf32>
    %86 = vector.broadcast %85 : vector<1x128xf32> to vector<24x128xf32>
    %87 = arith.mulf %83, %86 : vector<24x128xf32>
    %c1_69 = arith.constant 1 : index
    %c0_70 = arith.constant 0 : index
    %c0_71 = arith.constant 0 : index
    %88 = vector.load %arg5[%c1_69, %c0_70, %c0_71] : memref<4x1x128xf32, #tpu.memory_space<vmem>>, vector<1x1x128xf32>
    %89 = vector.shape_cast %88 : vector<1x1x128xf32> to vector<1x128xf32>
    %90 = vector.broadcast %89 : vector<1x128xf32> to vector<24x128xf32>
    %91 = arith.addf %87, %90 : vector<24x128xf32>
    %c12_i32 = arith.constant 12 : i32
    %92 = vector.broadcast %c12_i32 : i32 to vector<24x128xi32>
    %93 = arith.cmpi slt, %10, %92 : vector<24x128xi32>
    %cst_72 = arith.constant 0.000000e+00 : f32
    %94 = vector.broadcast %cst_72 : f32 to vector<24x128xf32>
    %95 = arith.select %93, %91, %94 : vector<24x128xi1>, vector<24x128xf32>
    %c8_73 = arith.constant 8 : index
    %c0_74 = arith.constant 0 : index
    %96 = vector.load %arg7[%c8_73, %c0_74] : memref<40x128xf32, #tpu.memory_space<vmem>>, vector<24x128xf32>
    tpu.vector_store %arg7[%c8_73, %c0_74], %95 {strides = array<i32>} : memref<40x128xf32, #tpu.memory_space<vmem>>, vector<24x128xf32>,
    %cst_75 = arith.constant 0.000000e+00 : f32
    %97 = vector.broadcast %cst_75 : f32 to vector<26x128xf32>
    %c7_76 = arith.constant 7 : index
    %c0_77 = arith.constant 0 : index
    %98 = vector.load %arg7[%c7_76, %c0_77] : memref<40x128xf32, #tpu.memory_space<vmem>>, vector<26x128xf32>
    %99 = arith.truncf %98 : vector<26x128xf32> to vector<26x128xbf16>
    %c2_78 = arith.constant 2 : index
    %c0_79 = arith.constant 0 : index
    %c0_80 = arith.constant 0 : index
    %c0_81 = arith.constant 0 : index
    %100 = vector.load %arg2[%c2_78, %c0_79, %c0_80, %c0_81] : memref<4x3x128x128xbf16, #tpu.memory_space<vmem>>, vector<1x1x128x128xbf16>
    %101 = vector.shape_cast %100 : vector<1x1x128x128xbf16> to vector<128x128xbf16>
    %cst_82 = arith.constant dense<0.000000e+00> : vector<26x128xf32>
    %102 = tpu.matmul %99, %101, %cst_82 {dimension_numbers = #tpu.dot_dimension_numbers<[1], [0], [0], [1], [0, 0, 1, 1], [], []>} : vector<26x128xbf16>, vector<128x128xbf16>, vector<26x128xf32> -> vector<26x128xf32>
    %103 = arith.addf %97, %102 : vector<26x128xf32>
    %c8_83 = arith.constant 8 : index
    %c0_84 = arith.constant 0 : index
    %104 = vector.load %arg7[%c8_83, %c0_84] : memref<40x128xf32, #tpu.memory_space<vmem>>, vector<26x128xf32>
    %105 = arith.truncf %104 : vector<26x128xf32> to vector<26x128xbf16>
    %c2_85 = arith.constant 2 : index
    %c1_86 = arith.constant 1 : index
    %c0_87 = arith.constant 0 : index
    %c0_88 = arith.constant 0 : index
    %106 = vector.load %arg2[%c2_85, %c1_86, %c0_87, %c0_88] : memref<4x3x128x128xbf16, #tpu.memory_space<vmem>>, vector<1x1x128x128xbf16>
    %107 = vector.shape_cast %106 : vector<1x1x128x128xbf16> to vector<128x128xbf16>
    %cst_89 = arith.constant dense<0.000000e+00> : vector<26x128xf32>
    %108 = tpu.matmul %105, %107, %cst_89 {dimension_numbers = #tpu.dot_dimension_numbers<[1], [0], [0], [1], [0, 0, 1, 1], [], []>} : vector<26x128xbf16>, vector<128x128xbf16>, vector<26x128xf32> -> vector<26x128xf32>
    %109 = arith.addf %103, %108 : vector<26x128xf32>
    %c9_90 = arith.constant 9 : index
    %c0_91 = arith.constant 0 : index
    %110 = vector.load %arg7[%c9_90, %c0_91] : memref<40x128xf32, #tpu.memory_space<vmem>>, vector<26x128xf32>
    %111 = arith.truncf %110 : vector<26x128xf32> to vector<26x128xbf16>
    %c2_92 = arith.constant 2 : index
    %c2_93 = arith.constant 2 : index
    %c0_94 = arith.constant 0 : index
    %c0_95 = arith.constant 0 : index
    %112 = vector.load %arg2[%c2_92, %c2_93, %c0_94, %c0_95] : memref<4x3x128x128xbf16, #tpu.memory_space<vmem>>, vector<1x1x128x128xbf16>
    %113 = vector.shape_cast %112 : vector<1x1x128x128xbf16> to vector<128x128xbf16>
    %cst_96 = arith.constant dense<0.000000e+00> : vector<26x128xf32>
    %114 = tpu.matmul %111, %113, %cst_96 {dimension_numbers = #tpu.dot_dimension_numbers<[1], [0], [0], [1], [0, 0, 1, 1], [], []>} : vector<26x128xbf16>, vector<128x128xbf16>, vector<26x128xf32> -> vector<26x128xf32>
    %115 = arith.addf %109, %114 : vector<26x128xf32>
    %c2_97 = arith.constant 2 : index
    %c0_98 = arith.constant 0 : index
    %c0_99 = arith.constant 0 : index
    %116 = vector.load %arg3[%c2_97, %c0_98, %c0_99] : memref<4x1x128xf32, #tpu.memory_space<vmem>>, vector<1x1x128xf32>
    %117 = vector.shape_cast %116 : vector<1x1x128xf32> to vector<1x128xf32>
    %118 = vector.broadcast %117 : vector<1x128xf32> to vector<26x128xf32>
    %119 = arith.addf %115, %118 : vector<26x128xf32>
    %cst_100 = arith.constant 0.000000e+00 : f32
    %120 = vector.broadcast %cst_100 : f32 to vector<26x128xf32>
    %121 = arith.maximumf %119, %120 : vector<26x128xf32>
    %122 = vector.extract_strided_slice %121 {offsets = [0, 0], sizes = [24, 128], strides = [1, 1]} : vector<26x128xf32> to vector<24x128xf32>
    %123 = vector.extract_strided_slice %121 {offsets = [1, 0], sizes = [24, 128], strides = [1, 1]} : vector<26x128xf32> to vector<24x128xf32>
    %124 = arith.maximumf %122, %123 : vector<24x128xf32>
    %125 = vector.extract_strided_slice %121 {offsets = [2, 0], sizes = [24, 128], strides = [1, 1]} : vector<26x128xf32> to vector<24x128xf32>
    %126 = arith.maximumf %124, %125 : vector<24x128xf32>
    %c2_101 = arith.constant 2 : index
    %c0_102 = arith.constant 0 : index
    %c0_103 = arith.constant 0 : index
    %127 = vector.load %arg4[%c2_101, %c0_102, %c0_103] : memref<4x1x128xf32, #tpu.memory_space<vmem>>, vector<1x1x128xf32>
    %128 = vector.shape_cast %127 : vector<1x1x128xf32> to vector<1x128xf32>
    %129 = vector.broadcast %128 : vector<1x128xf32> to vector<24x128xf32>
    %130 = arith.mulf %126, %129 : vector<24x128xf32>
    %c2_104 = arith.constant 2 : index
    %c0_105 = arith.constant 0 : index
    %c0_106 = arith.constant 0 : index
    %131 = vector.load %arg5[%c2_104, %c0_105, %c0_106] : memref<4x1x128xf32, #tpu.memory_space<vmem>>, vector<1x1x128xf32>
    %132 = vector.shape_cast %131 : vector<1x1x128xf32> to vector<1x128xf32>
    %133 = vector.broadcast %132 : vector<1x128xf32> to vector<24x128xf32>
    %134 = arith.addf %130, %133 : vector<24x128xf32>
    %c10_i32 = arith.constant 10 : i32
    %135 = vector.broadcast %c10_i32 : i32 to vector<24x128xi32>
    %136 = arith.cmpi slt, %10, %135 : vector<24x128xi32>
    %cst_107 = arith.constant 0.000000e+00 : f32
    %137 = vector.broadcast %cst_107 : f32 to vector<24x128xf32>
    %138 = arith.select %136, %134, %137 : vector<24x128xi1>, vector<24x128xf32>
    %c8_108 = arith.constant 8 : index
    %c0_109 = arith.constant 0 : index
    %139 = vector.load %arg7[%c8_108, %c0_109] : memref<40x128xf32, #tpu.memory_space<vmem>>, vector<24x128xf32>
    tpu.vector_store %arg7[%c8_108, %c0_109], %138 {strides = array<i32>} : memref<40x128xf32, #tpu.memory_space<vmem>>, vector<24x128xf32>,
    %cst_110 = arith.constant 0.000000e+00 : f32
    %140 = vector.broadcast %cst_110 : f32 to vector<26x128xf32>
    %c7_111 = arith.constant 7 : index
    %c0_112 = arith.constant 0 : index
    %141 = vector.load %arg7[%c7_111, %c0_112] : memref<40x128xf32, #tpu.memory_space<vmem>>, vector<26x128xf32>
    %142 = arith.truncf %141 : vector<26x128xf32> to vector<26x128xbf16>
    %c3 = arith.constant 3 : index
    %c0_113 = arith.constant 0 : index
    %c0_114 = arith.constant 0 : index
    %c0_115 = arith.constant 0 : index
    %143 = vector.load %arg2[%c3, %c0_113, %c0_114, %c0_115] : memref<4x3x128x128xbf16, #tpu.memory_space<vmem>>, vector<1x1x128x128xbf16>
    %144 = vector.shape_cast %143 : vector<1x1x128x128xbf16> to vector<128x128xbf16>
    %cst_116 = arith.constant dense<0.000000e+00> : vector<26x128xf32>
    %145 = tpu.matmul %142, %144, %cst_116 {dimension_numbers = #tpu.dot_dimension_numbers<[1], [0], [0], [1], [0, 0, 1, 1], [], []>} : vector<26x128xbf16>, vector<128x128xbf16>, vector<26x128xf32> -> vector<26x128xf32>
    %146 = arith.addf %140, %145 : vector<26x128xf32>
    %c8_117 = arith.constant 8 : index
    %c0_118 = arith.constant 0 : index
    %147 = vector.load %arg7[%c8_117, %c0_118] : memref<40x128xf32, #tpu.memory_space<vmem>>, vector<26x128xf32>
    %148 = arith.truncf %147 : vector<26x128xf32> to vector<26x128xbf16>
    %c3_119 = arith.constant 3 : index
    %c1_120 = arith.constant 1 : index
    %c0_121 = arith.constant 0 : index
    %c0_122 = arith.constant 0 : index
    %149 = vector.load %arg2[%c3_119, %c1_120, %c0_121, %c0_122] : memref<4x3x128x128xbf16, #tpu.memory_space<vmem>>, vector<1x1x128x128xbf16>
    %150 = vector.shape_cast %149 : vector<1x1x128x128xbf16> to vector<128x128xbf16>
    %cst_123 = arith.constant dense<0.000000e+00> : vector<26x128xf32>
    %151 = tpu.matmul %148, %150, %cst_123 {dimension_numbers = #tpu.dot_dimension_numbers<[1], [0], [0], [1], [0, 0, 1, 1], [], []>} : vector<26x128xbf16>, vector<128x128xbf16>, vector<26x128xf32> -> vector<26x128xf32>
    %152 = arith.addf %146, %151 : vector<26x128xf32>
    %c9_124 = arith.constant 9 : index
    %c0_125 = arith.constant 0 : index
    %153 = vector.load %arg7[%c9_124, %c0_125] : memref<40x128xf32, #tpu.memory_space<vmem>>, vector<26x128xf32>
    %154 = arith.truncf %153 : vector<26x128xf32> to vector<26x128xbf16>
    %c3_126 = arith.constant 3 : index
    %c2_127 = arith.constant 2 : index
    %c0_128 = arith.constant 0 : index
    %c0_129 = arith.constant 0 : index
    %155 = vector.load %arg2[%c3_126, %c2_127, %c0_128, %c0_129] : memref<4x3x128x128xbf16, #tpu.memory_space<vmem>>, vector<1x1x128x128xbf16>
    %156 = vector.shape_cast %155 : vector<1x1x128x128xbf16> to vector<128x128xbf16>
    %cst_130 = arith.constant dense<0.000000e+00> : vector<26x128xf32>
    %157 = tpu.matmul %154, %156, %cst_130 {dimension_numbers = #tpu.dot_dimension_numbers<[1], [0], [0], [1], [0, 0, 1, 1], [], []>} : vector<26x128xbf16>, vector<128x128xbf16>, vector<26x128xf32> -> vector<26x128xf32>
    %158 = arith.addf %152, %157 : vector<26x128xf32>
    %c3_131 = arith.constant 3 : index
    %c0_132 = arith.constant 0 : index
    %c0_133 = arith.constant 0 : index
    %159 = vector.load %arg3[%c3_131, %c0_132, %c0_133] : memref<4x1x128xf32, #tpu.memory_space<vmem>>, vector<1x1x128xf32>
    %160 = vector.shape_cast %159 : vector<1x1x128xf32> to vector<1x128xf32>
    %161 = vector.broadcast %160 : vector<1x128xf32> to vector<26x128xf32>
    %162 = arith.addf %158, %161 : vector<26x128xf32>
    %cst_134 = arith.constant 0.000000e+00 : f32
    %163 = vector.broadcast %cst_134 : f32 to vector<26x128xf32>
    %164 = arith.maximumf %162, %163 : vector<26x128xf32>
    %165 = vector.extract_strided_slice %164 {offsets = [0, 0], sizes = [24, 128], strides = [1, 1]} : vector<26x128xf32> to vector<24x128xf32>
    %166 = vector.extract_strided_slice %164 {offsets = [1, 0], sizes = [24, 128], strides = [1, 1]} : vector<26x128xf32> to vector<24x128xf32>
    %167 = arith.maximumf %165, %166 : vector<24x128xf32>
    %168 = vector.extract_strided_slice %164 {offsets = [2, 0], sizes = [24, 128], strides = [1, 1]} : vector<26x128xf32> to vector<24x128xf32>
    %169 = arith.maximumf %167, %168 : vector<24x128xf32>
    %c3_135 = arith.constant 3 : index
    %c0_136 = arith.constant 0 : index
    %c0_137 = arith.constant 0 : index
    %170 = vector.load %arg4[%c3_135, %c0_136, %c0_137] : memref<4x1x128xf32, #tpu.memory_space<vmem>>, vector<1x1x128xf32>
    %171 = vector.shape_cast %170 : vector<1x1x128xf32> to vector<1x128xf32>
    %172 = vector.broadcast %171 : vector<1x128xf32> to vector<24x128xf32>
    %173 = arith.mulf %169, %172 : vector<24x128xf32>
    %c3_138 = arith.constant 3 : index
    %c0_139 = arith.constant 0 : index
    %c0_140 = arith.constant 0 : index
    %174 = vector.load %arg5[%c3_138, %c0_139, %c0_140] : memref<4x1x128xf32, #tpu.memory_space<vmem>>, vector<1x1x128xf32>
    %175 = vector.shape_cast %174 : vector<1x1x128xf32> to vector<1x128xf32>
    %176 = vector.broadcast %175 : vector<1x128xf32> to vector<24x128xf32>
    %177 = arith.addf %173, %176 : vector<24x128xf32>
    %178 = vector.extract_strided_slice %177 {offsets = [0, 0], sizes = [8, 128], strides = [1, 1]} : vector<24x128xf32> to vector<8x128xf32>
    %c0_141 = arith.constant 0 : index
    %c0_142 = arith.constant 0 : index
    %c0_143 = arith.constant 0 : index
    %179 = vector.load %arg6[%c0_141, %c0_142, %c0_143] : memref<1x8x128xf32, #tpu.memory_space<vmem>>, vector<1x8x128xf32>
    %180 = vector.shape_cast %179 : vector<1x8x128xf32> to vector<8x128xf32>
    %181 = vector.shape_cast %178 : vector<8x128xf32> to vector<1x8x128xf32>
    tpu.vector_store %arg6[%c0_141, %c0_142, %c0_143], %181 {strides = array<i32>} : memref<1x8x128xf32, #tpu.memory_space<vmem>>, vector<1x8x128xf32>,
    return
  }
  func.func @transform_0(%arg0: i32) -> (i32, i32, i32) {
    %c0_i32 = arith.constant 0 : i32
    %c0_i32_0 = arith.constant 0 : i32
    %c0_i32_1 = arith.constant 0 : i32
    return %arg0, %c0_i32, %c0_i32_0 : i32, i32, i32
  }
  func.func @transform_1(%arg0: i32) -> (i32, i32, i32, i32) {
    %c0_i32 = arith.constant 0 : i32
    %c0_i32_0 = arith.constant 0 : i32
    %c0_i32_1 = arith.constant 0 : i32
    %c0_i32_2 = arith.constant 0 : i32
    %c0_i32_3 = arith.constant 0 : i32
    return %c0_i32, %c0_i32_0, %c0_i32_1, %c0_i32_2 : i32, i32, i32, i32
  }
  func.func @transform_2(%arg0: i32) -> (i32, i32, i32) {
    %c0_i32 = arith.constant 0 : i32
    %c0_i32_0 = arith.constant 0 : i32
    %c0_i32_1 = arith.constant 0 : i32
    %c0_i32_2 = arith.constant 0 : i32
    return %c0_i32, %c0_i32_0, %c0_i32_1 : i32, i32, i32
  }
  func.func @transform_3(%arg0: i32) -> (i32, i32, i32) {
    %c0_i32 = arith.constant 0 : i32
    %c0_i32_0 = arith.constant 0 : i32
    %c0_i32_1 = arith.constant 0 : i32
    %c0_i32_2 = arith.constant 0 : i32
    return %c0_i32, %c0_i32_0, %c0_i32_1 : i32, i32, i32
  }
  func.func @transform_4(%arg0: i32) -> (i32, i32, i32) {
    %c0_i32 = arith.constant 0 : i32
    %c0_i32_0 = arith.constant 0 : i32
    %c0_i32_1 = arith.constant 0 : i32
    %c0_i32_2 = arith.constant 0 : i32
    return %c0_i32, %c0_i32_0, %c0_i32_1 : i32, i32, i32
  }
  func.func @transform_5(%arg0: i32) -> (i32, i32, i32) {
    %c0_i32 = arith.constant 0 : i32
    %c0_i32_0 = arith.constant 0 : i32
    %c0_i32_1 = arith.constant 0 : i32
    return %arg0, %c0_i32, %c0_i32_0 : i32, i32, i32
  }
}

</mosaic_0001>

<bundles_post_ra>
// kernel: tpu_custom_call.1
= control target key start
LH: loop header
LB: loop body
LE: loop exit
PB: predicated region body
PF: predicated region fallthrough
CT: control target
= control target key end

     0   :  { %10 = vsyncpa [#allocation4], 0  ;;  %s3196_s0 = inlined_call_operand.hbm [shape: f32[2,16,128], index: 0, kind: input, shape index: {}]   ;;  %s3197_s1 = inlined_call_operand.hbm [shape: bf16[4,3,128,128], index: 1, kind: input, shape index: {}]   ;;  %s3198_s2 = inlined_call_operand.vmem [shape: f32[4,1,128], index: 2, kind: input, shape index: {}]   ;;  %s3199_s3 = inlined_call_operand.vmem [shape: f32[4,1,128], index: 3, kind: input, shape index: {}]   ;;  %s3200_s4 = inlined_call_operand.vmem [shape: f32[4,1,128], index: 4, kind: input, shape index: {}]   ;;  %s3201_s5 = inlined_call_operand.hbm [shape: f32[2,8,128], index: 5, kind: output, shape index: {}]  }
   0x1   :  { %12 = vsyncpa [#allocation4 + $0x1], 0 }
   0x2   :  { %13 = vsyncpa [#allocation7], 0 }
   0x3   :  { %14 = vsyncpa [#allocation5], 0 }
   0x4   :  { %16 = vsyncpa [#allocation5 + $0x1], 0  ;;  %s2914_s18 = smov 0   ;;  %s2916_s19 = smov 0  }
   0x5   :  { %s2918_s20 = smov 0   ;;  %s2920_s21 = smov 0  }
   0x6 LB: > { %s2935_s22 = sadd.s32 4294967295, %s2873_s21   ;;  %s2084_s23 = sadd.s32 4294967294, %s2873_s21   ;;  %s2873_s21 = sphi %s2920_s21, %s3221_s21   ;;  %s2869_s20 = sphi %s2918_s20, %s3220_s20   ;;  %s2865_s19 = sphi %s2916_s19, %s3219_s19   ;;  %s2861_s18 = sphi %s2914_s18, %s3218_s18  }
   0x7   : > { %p42_p0 = scmp.ne.s32.totalorder %s2865_s19, %s2861_s18  ;;  %p3202_p1 = scmp.eq.s32.totalorder %s2935_s22, 0 }
   0x8   : > { %p156_p3 = scmp.eq.s32.totalorder %s2084_s23, 1  ;;  %p2085_p5 = scmp.ge.s32.totalorder %s2873_s21, 1 }
   0x9   : > { %p2944_p4 = por %p3202_p1, %p42_p0  ;;  %p163_p7 = scmp.lt.s32.totalorder %s2873_s21, 3 }
   0xa   : > { %p2949_p6 = por %p156_p3, %p42_p0  ;;  %s2875_s27 = smov [#allocation6]  }
   0xb   : > { %s3205_s24 = scalar_select %p2944_p4, 1, 0 }
   0xc   : > { %s3206_s25 = scalar_select %p2949_p6, 1, 0 }
   0xd   : > { %p2954_p8 = pnand %p2085_p5, %p163_p7  ;;  %s175_s28 = sshll.u32 %s2875_s27, 4  ;;  %s2958_s28 = int_to_ptr.vmem [resolvable:$true] %s175_s28 }
   0xe   : > { %s2970_s30 = sadd.s32 1, %s2873_s21   ;;  %s29_s6 = sadd.s32 1, %s2869_s20 }
   0xf   : > { %s3207_s26 = scalar_select %p2954_p8, 1, 0 }
  0x10   : > { %p2585_p9 = pneg %p2954_p8  ;;  %s26_s7 = ssub.s32 %s2873_s21, %s2970_s30 }
  0x11   : > { %s2745_s10 = scalar_lea.hbm %s3197_s1, 12288 }
  0x12   : > { %p2965_p11 = pnand %p2585_p9, %p3202_p1  ;;  %p2746_p12 = scmp.ne.s32.totalorder %s3197_s1, %s2745_s10 }
  0x13   : > { %p2752_p5 = scmp.lt.u32.totalorder %s2745_s10, %s3197_s1 }
  0x14   : > { %p2747_p13 = pneg %p2965_p11 }
  0x16   : > { %p2748_p0 = pnand %p2747_p13, %p2746_p12 }
  0x18   : > { %p2749_p3 = pneg %p2748_p0 }
  0x1a   : > { %p2754_p7 = pnand %p2752_p5, %p2749_p3 }
  0x1c   : > { %2757 = shalt.err (!%p2754_p7)
}
  0x1d   : > { %s2758_s15 = scalar_lea.vmem %s2958_s28, 12288  ;;  %p2766_p2 = scmp.lt.s32.totalorder %s2958_s28, %s2958_s28 }
  0x1e   : > { %p2759_p9 = scmp.ne.s32.totalorder %s2958_s28, %s2758_s15  ;;  %p2767_p6 = scmp.lt.s32.totalorder %s2758_s15, %s2758_s15 }
  0x20   : > { %p2761_p10 = pnand %p2759_p9, %p2747_p13  ;;  %p2768_p4 = por %p2767_p6, %p2766_p2 }
  0x22   : > { %p2762_p1 = pneg %p2761_p10 }
  0x24   : > { %p2769_p8 = pnand %p2768_p4, %p2762_p1 }
  0x26   : > { %2772 = shalt.err (!%p2769_p8)
}
  0x27   : > { %s2876_s16 = smov 64   ;;  %s2877_s17 = smov 4  }
  0x28   : > { %2588 = dma.hbm_to_vmem [thread:$0]  (!%p2965_p11), %s3197_s1, 12288, %s2958_s28, [#allocation7], %s2876_s16, %s2876_s16, %s2877_s17  }
  0x29   : > { %p27_p2 = scmp.eq.s32.totalorder %s26_s7, 0  ;;  %p36_p1 = scmp.ne.s32.totalorder %s2869_s20, %s2865_s19 }
  0x2a   : > { %p37_p4 = scmp.eq.s32.totalorder %s2873_s21, 0  ;;  %p2598_p6 = scmp.lt.s32.totalorder %s2873_s21, 2 }
  0x2b   : > { %s3001_s8 = scalar_select %p27_p2, %s2869_s20, %s29_s6  }
  0x2c   : > { %p38_p8 = por %p37_p4, %p36_p1  ;;  %p3209_p10 = scmp.eq.s32.totalorder %s2935_s22, 1 }
  0x2d   : > { %s198_s10 = sand.u32 1, %s2869_s20   ;;  %s2216_s11 = sshll.u32 %s2873_s21, 8 }
  0x2e   : > { %p3005_p12 = por %p3209_p10, %p36_p1  ;;  %s2088_s12 = sshll.u32 %s198_s10, 4 }
  0x2f   : > { %s3014_s14 = scalar_lea.hbm %s3196_s0, %s2216_s11  ;;  %s202_s28 = scalar_lea.vmem [#allocation3], %s2088_s12 }
  0x30   : > { %s209_s6 = sshll.u32 %s202_s28, 4  ;;  %p3016_p11 = pnand %p2598_p6, %p38_p8  ;;  %s3020_s6 = int_to_ptr.vmem [resolvable:$true] %s209_s6 }
  0x31   : > { %s3022_s15 = scalar_lea.sflag [#allocation4], %s198_s10  ;;  %s2773_s16 = scalar_lea.hbm %s3014_s14, 256 }
  0x32   : > { %p2774_p13 = scmp.ne.s32.totalorder %s3014_s14, %s2773_s16  ;;  %p2775_p0 = pneg %p3016_p11 }
  0x33   : > { %s2778_s27 = scalar_lea.hbm %s3196_s0, 512  ;;  %p2779_p7 = scmp.lt.u32.totalorder %s3014_s14, %s3196_s0 }
  0x34   : > { %p2776_p3 = pnand %p2775_p0, %p2774_p13  ;;  %p2780_p9 = scmp.lt.u32.totalorder %s2778_s27, %s2773_s16 }
  0x35   : > { %p2782_p1 = scmp.lt.u32.totalorder %s2773_s16, %s3014_s14 }
  0x36   : > { %p2777_p5 = pneg %p2776_p3  ;;  %p2781_p2 = por %p2780_p9, %p2779_p7 }
  0x38   : > { %p2783_p4 = por %p2782_p1, %p2781_p2 }
  0x3a   : > { %p2784_p6 = pnand %p2783_p4, %p2777_p5 }
  0x3c   : > { %2787 = shalt.err (!%p2784_p6)
}
  0x3d   : > { %s2788_s10 = scalar_lea.vmem %s3020_s6, 256  ;;  %s2878_s29 = smov [#allocation3]  }
  0x3e   : > { %p2789_p8 = scmp.ne.s32.totalorder %s3020_s6, %s2788_s10  ;;  %s2793_s13 = sshll.u32 %s2878_s29, 4  ;;  %s2794_s13 = int_to_ptr.vmem [resolvable:$false] %s2793_s13 }
  0x3f   : > { %s2795_s28 = scalar_lea.vmem %s2794_s13, 512  ;;  %p2796_p3 = scmp.lt.s32.totalorder %s3020_s6, %s2794_s13 }
  0x40   : > { %p2791_p10 = pnand %p2789_p8, %p2775_p0  ;;  %p2797_p7 = scmp.lt.s32.totalorder %s2795_s28, %s2788_s10 }
  0x42   : > { %p2792_p13 = pneg %p2791_p10  ;;  %p2798_p9 = por %p2797_p7, %p2796_p3 }
  0x44   : > { %p2799_p2 = pnand %p2798_p9, %p2792_p13 }
  0x46   : > { %2802 = shalt.err (!%p2799_p2)
}
  0x47   : > { %s2879_s16 = smov 128   ;;  %s2880_s17 = smov 8  }
  0x48   : > { %2592 = dma.hbm_to_vmem [thread:$0]  (!%p3016_p11), %s3014_s14, 256, %s3020_s6, %s3022_s15, %s2879_s16, %s2879_s16, %s2880_s17  }
  0x49   : > { %p3212_p0 = scmp.ne.s32.totalorder %s3207_s26, 0 }
  0x4a   : > { %s3053_s23 = sand.u32 (!%p3212_p0), 1, %s2865_s19   ;;  %p3213_p5 = scmp.ne.s32.totalorder (!%p3212_p0), %s3205_s24, 0 }
  0x4b   : > { %221 = sbr.rel (%p3212_p0) target bundleno = 1201 (0x4b1), region = 40  ;;  %s2092_s27 = sshll.u32 (!%p3212_p0), %s3053_s23, 4 }
  0x4c   : > { %s224_s11 = scalar_lea.sflag (!%p3212_p0), [#allocation4], %s3053_s23  ;;  %s3057_s12 = scalar_lea.vmem (!%p3212_p0), [#allocation3], %s2092_s27 }
  0x52   : > { %2848 = dma.done.wait (%p3213_p5), %s224_s11, 256  }
  0x53   : > { %2850 = vsyncadd (%p3213_p5), %s224_s11, 4294967040  ;;  %p3214_p11 = scmp.eq.s32.totalorder %s2935_s22, 0 }
  0x55   : > { %2852 = dma.done.wait (%p3214_p11), [#allocation7], 12288   ;;  %p3215_p1 = pmov %p3214_p11 }
  0x56   : > { %v2881_v0 = vmov 0.0   ;;  %v2639_v1 = vld [vmem:[#allocation6 + $0x40] sm:$0xff]   ;;  %v2641_v3 = vld [vmem:[#allocation6 + $0x48] sm:$0xff]   ;;  %v2643_v5 = vld [vmem:[#allocation6 + $0x50] sm:$0xff]   ;;  %vm652_vm0 = vcmask 1046528   ;;  %vm666_vm1 = vcmask 1045504  }
  0x57   : > { %2854 = vsyncadd (%p3215_p1), [#allocation7], 4294955008  ;;  %259 = vst [vmem:[#allocation2] sm:$0xff] %v2881_v0  ;;  %v2640_v2 = vld [vmem:[#allocation6] sm:$0xff]   ;;  %2337 = vmatprep.subr.bf16.mxu0 %v2639_v1  ;;  %v2642_v4 = vld [vmem:[#allocation6 + $0x8] sm:$0xff]   ;;  %vm2882_vm3 = vmmov 1  }
  0x58   : > { %264 = vst [vmem:[#allocation2 + $0x18] sm:$0xff] %v2881_v0  ;;  %265 = vst [vmem:[#allocation2 + $0x20] sm:$0xff] %v2881_v0  ;;  %2357 = vmatprep.subr.bf16.mxu1 %v2640_v2  ;;  %2338 = vmatpush3.bf16.msra.mxu0 %v2639_v1  ;;  %v2644_v6 = vld [vmem:[#allocation6 + $0x10] sm:$0xff]   ;;  %v2645_v7 = vld [vmem:[#allocation6 + $0x58] sm:$0xff]   ;;  %s2094_s15 = sshll.u32 %s3053_s23, 3  ;;  %s2213_s16 = sshll.u32 %s2935_s22, 7 }
  0x59   : > { %2358 = vmatpush3.bf16.msra.mxu1 %v2640_v2  ;;  %2339 = vmatprep.subr.bf16.mxu0 %v2641_v3  ;;  %v2646_v8 = vld [vmem:[#allocation6 + $0x18] sm:$0xff]   ;;  %v2647_v9 = vld [vmem:[#allocation6 + $0x60] sm:$0xff]   ;;  %v2649_v11 = vld [vmem:[#allocation6 + $0x68] sm:$0xff]   ;;  %s257_s17 = scalar_lea.vmem [#allocation8], %s2094_s15  ;;  %s3152_s24 = scalar_lea.hbm %s3201_s5, %s2213_s16 }
  0x5a   : > { %2359 = vmatprep.subr.bf16.mxu1 %v2642_v4  ;;  %v2648_v10 = vld [vmem:[#allocation6 + $0x20] sm:$0xff]   ;;  %v261_v13 = vld [vmem:[%s3057_s12 + $0x8] sm:$0xff]  ;;  %v2651_v16 = vld [vmem:[#allocation6 + $0x70] sm:$0xff]   ;;  %s2004_s27 = sshll.u32 %s257_s17, 4  ;;  %s1991_s26 = scalar_lea.sflag [#allocation5], %s3053_s23  ;;  %s3154_s27 = int_to_ptr.vmem [resolvable:$true] %s2004_s27 }
  0x5b   : > { %v260_v12 = vld [vmem:[%s3057_s12] sm:$0xff]  ;;  %v2650_v14 = vld [vmem:[#allocation6 + $0x28] sm:$0xff]   ;;  %263 = vst [vmem:[#allocation2 + $0x10] sm:$0xff] %v261_v13  ;;  %v2653_v18 = vld [vmem:[#allocation6 + $0x78] sm:$0xff]   ;;  %s2803_s14 = scalar_lea.vmem %s3154_s27, 128  ;;  %s2883_s22 = smov [#allocation8]  }
  0x5c   : > { %2340 = vmatpush3.bf16.msra.mxu0 %v2641_v3  ;;  %262 = vst [vmem:[#allocation2 + $0x8] sm:$0xff] %v260_v12  ;;  %v296_v15 = vpack.c.bf16 %v261_v13, %v260_v12  ;;  %v2652_v17 = vld [vmem:[#allocation6 + $0x30] sm:$0xff]   ;;  %v2654_v19 = vld [vmem:[#allocation6 + $0x38] sm:$0xff]   ;;  %v2655_v26 = vld [vmem:[#allocation6 + $0x80] sm:$0xff]   ;;  %p2804_p4 = scmp.ne.s32.totalorder %s3154_s27, %s2803_s14  ;;  %s2807_s6 = sshll.u32 %s2883_s22, 4  ;;  %s2808_s6 = int_to_ptr.vmem [resolvable:$false] %s2807_s6 }
  0x5d   : > { %2360 = vmatpush3.bf16.msra.mxu1 %v2642_v4  ;;  %2341 = vmatprep.subr.bf16.mxu0 %v2643_v5  ;;  %v2656_v31 = vld [vmem:[#allocation6 + $0x88] sm:$0xff]   ;;  %v2657_v34 = vld [vmem:[#allocation6 + $0x90] sm:$0xff]   ;;  %v2658_v35 = vld [vmem:[#allocation6 + $0x98] sm:$0xff]   ;;  %s2809_s7 = scalar_lea.vmem %s2808_s6, 256  ;;  %p2810_p10 = scmp.lt.s32.totalorder %s3154_s27, %s2808_s6 }
  0x5e   : > { %2361 = vmatprep.subr.bf16.mxu1 %v2644_v6  ;;  %2353 = vmatprep.mubr.bf16.mxu0 %v296_v15  ;;  %v2659_v36 = vld [vmem:[#allocation6 + $0xa0] sm:$0xff]   ;;  %v2660_v37 = vld [vmem:[#allocation6 + $0xa8] sm:$0xff]   ;;  %v2661_v38 = vld [vmem:[#allocation6 + $0xb0] sm:$0xff]   ;;  %p2805_p6 = pnand %p2804_p4, %p3005_p12  ;;  %p2811_p13 = scmp.lt.s32.totalorder %s2809_s7, %s2803_s14 }
  0x5f   : > { %v295_v23 = vld [vmem:[#allocation2 + $0x20] sm:$0x3]  ;;  %v2663_v42 = vld [vmem:[#allocation6 + $0x100] sm:$0xff]   ;;  %v2665_v43 = vld [vmem:[#allocation6 + $0x108] sm:$0xff]  }
  0x60   : > { %2342 = vmatpush3.bf16.msra.mxu0 %v2643_v5  ;;  %v273_v25 = vld [vmem:[#allocation2 + $0x1f] sm:$0x3]  ;;  %v297_v30 = vpack.c.bf16 %v295_v23, %v2881_v0  ;;  %v512_v40 = vld [vmem:[#allocation2 + $0x21] sm:$0x3]  ;;  %v2664_v45 = vld [vmem:[#allocation6 + $0xc0] sm:$0xff]   ;;  %p2806_p8 = pneg %p2805_p6  ;;  %p2812_p3 = por %p2811_p13, %p2810_p10 }
  0x61   : > { %2362 = vmatpush3.bf16.msra.mxu1 %v2644_v6  ;;  %2343 = vmatprep.subr.bf16.mxu0 %v2645_v7  ;;  %v511_v29 = vld [vmem:[#allocation2 + $0x19] sm:$0xff]  ;;  %v2666_v47 = vld [vmem:[#allocation6 + $0xc8] sm:$0xff]   ;;  %v2671_v48 = vld [vmem:[#allocation6 + $0x120] sm:$0xff]  }
  0x62   : > { %2363 = vmatprep.subr.bf16.mxu1 %v2646_v8  ;;  %v272_v24 = vld [vmem:[#allocation2 + $0x17] sm:$0xff]  ;;  %v2662_v39 = vld [vmem:[#allocation6 + $0xb8] sm:$0xff]   ;;  %v514_v41 = vpack.c.bf16 %v512_v40, %v511_v29  ;;  %v2672_v53 = vld [vmem:[#allocation6 + $0xe0] sm:$0xff]   ;;  %p2813_p7 = pnand %p2812_p3, %p2806_p8 }
  0x63   : > { %v270_v20 = vld [vmem:[#allocation2 + $0x7] sm:$0xff]  ;;  %v271_v21 = vld [vmem:[#allocation2 + $0xf] sm:$0xff]  ;;  %v275_v32 = vpack.c.bf16 %v273_v25, %v272_v24  ;;  %v2667_v44 = vld [vmem:[#allocation6 + $0x110] sm:$0xff]  }
  0x64   : > { %2344 = vmatpush3.bf16.msra.mxu0 %v2645_v7  ;;  %v274_v22 = vpack.c.bf16 %v271_v21, %v270_v20  ;;  %v509_v27 = vld [vmem:[#allocation2 + $0x9] sm:$0xff]  ;;  %v510_v28 = vld [vmem:[#allocation2 + $0x11] sm:$0xff]  ;;  %v2669_v46 = vld [vmem:[#allocation6 + $0x118] sm:$0xff]  }
  0x65   : > { %2364 = vmatpush3.bf16.msra.mxu1 %v2646_v8  ;;  %2345 = vmatprep.subr.bf16.mxu0 %v2647_v9  ;;  %708 = vst [vmem:[#allocation2 + $0x18] sm:$0xff] %v2881_v0  ;;  %v513_v33 = vpack.c.bf16 %v510_v28, %v509_v27  ;;  %v2668_v49 = vld [vmem:[#allocation6 + $0xd0] sm:$0xff]   ;;  %v2673_v50 = vld [vmem:[#allocation6 + $0x128] sm:$0xff]   ;;  %v2670_v51 = vld [vmem:[#allocation6 + $0xd8] sm:$0xff]  }
  0x66   : > { %2365 = vmatprep.subr.bf16.mxu1 %v2648_v10  ;;  %2373 = vmatprep.mubr.bf16.mxu1 %v274_v22  ;;  %v2675_v52 = vld [vmem:[#allocation6 + $0x130] sm:$0xff]   ;;  %v2677_v54 = vld [vmem:[#allocation6 + $0x138] sm:$0xff]   ;;  %v2674_v55 = vld [vmem:[#allocation6 + $0xe8] sm:$0xff]  }
  0x67   : > { %v2676_v56 = vld [vmem:[#allocation6 + $0xf0] sm:$0xff]   ;;  %v3074_v57 = vld [vmem:[#allocation6 + $0x140] sm:$0xff]   ;;  %v2678_v58 = vld [vmem:[#allocation6 + $0xf8] sm:$0xff]  }
  0x68   : > { %2346 = vmatpush3.bf16.msra.mxu0 %v2647_v9  ;;  %v2119_v8 = vld [vmem:[%s3198_s2] ss:$0 sm:$0xff] }
  0x69   : > { %2366 = vmatpush3.bf16.msra.mxu1 %v2648_v10  ;;  %2347 = vmatprep.subr.bf16.mxu0 %v2649_v11 }
  0x6a   : > { %2367 = vmatprep.subr.bf16.mxu1 %v2650_v14 }
  0x6c   : > { %2348 = vmatpush3.bf16.msra.mxu0 %v2649_v11 }
  0x6d   : > { %2368 = vmatpush3.bf16.msra.mxu1 %v2650_v14  ;;  %2349 = vmatprep.subr.bf16.mxu0 %v2651_v16 }
  0x6e   : > { %2369 = vmatprep.subr.bf16.mxu1 %v2652_v17 }
  0x70   : > { %2350 = vmatpush3.bf16.msra.mxu0 %v2651_v16 }
  0x71   : > { %2370 = vmatpush3.bf16.msra.mxu1 %v2652_v17  ;;  %2351 = vmatprep.subr.bf16.mxu0 %v2653_v18 }
  0x72   : > { %2371 = vmatprep.subr.bf16.mxu1 %v2654_v19 }
  0x74   : > { %2352 = vmatpush3.bf16.msra.mxu0 %v2653_v18  ;;  %v266_v18 = vlaneseq }
  0x75   : > { %2372 = vmatpush3.bf16.msra.mxu1 %v2654_v19  ;;  %2377 = vmatprep.subr.bf16.mxu0 %v2655_v26 }
  0x76   : > { %2397 = vmatprep.subr.bf16.mxu1 %v2663_v42  ;;  %v267_v24 = vshrl.u32 %v266_v18, 7  ;;  %v3097_v18 = vld [vmem:[#allocation6 + $0x200] sm:$0xff]  }
  0x77   : > { %2354 = vmatmul.mubr.bf16.vlgmr.msra.gmra.mrb[0].mxu0 %v297_v30 }
  0x78   : > { %2374 = vmatmul.mubr.bf16.vlgmr.msra.gmra.mrb[0].mxu1 %v275_v32  ;;  %2378 = vmatpush3.bf16.msra.mxu0 %v2655_v26 }
  0x79   : > { %2379 = vmatprep.subr.bf16.mxu0 %v2656_v31  ;;  %2393 = vmatprep.mubr.bf16.mxu0 %v513_v33 }
  0x7a   : > { %2398 = vmatpush3.bf16.msra.mxu1 %v2663_v42  ;;  %v735_v42 = vld [vmem:[#allocation2 + $0x20] sm:$0x3] }
  0x7b   : > { %2399 = vmatprep.subr.bf16.mxu1 %v2665_v43 }
  0x7c   : > { %2380 = vmatpush3.bf16.msra.mxu0 %v2656_v31 }
  0x7d   : > { %2381 = vmatprep.subr.bf16.mxu0 %v2657_v34 }
  0x7e   : > { %2400 = vmatpush3.bf16.msra.mxu1 %v2665_v43 }
  0x7f   : > { %2401 = vmatprep.subr.bf16.mxu1 %v2667_v44 }
  0x80   : > { %2382 = vmatpush3.bf16.msra.mxu0 %v2657_v34 }
  0x81   : > { %2383 = vmatprep.subr.bf16.mxu0 %v2658_v35 }
  0x82   : > { %2402 = vmatpush3.bf16.msra.mxu1 %v2667_v44 }
  0x83   : > { %2403 = vmatprep.subr.bf16.mxu1 %v2669_v46 }
  0x84   : > { %2384 = vmatpush3.bf16.msra.mxu0 %v2658_v35  ;;  %v3084_v35 = vadd.s32 8, %v267_v24 }
  0x85   : > { %2385 = vmatprep.subr.bf16.mxu0 %v2659_v36 }
  0x86   : > { %2404 = vmatpush3.bf16.msra.mxu1 %v2669_v46  ;;  %vm701_vm2 = vcmp.lt.s32.totalorder %v3084_v35, 14  ;;  %v737_v46 = vpack.c.bf16 %v735_v42, %v2881_v0  ;;  %vm1142_vm5 = vcmp.lt.s32.totalorder %v3084_v35, 12  ;;  %vm1583_vm7 = vcmp.lt.s32.totalorder %v3084_v35, 10 }
  0x87   : > { %2405 = vmatprep.subr.bf16.mxu1 %v2671_v48  ;;  %vm2736_vm4 = vmpackc.low %vm701_vm2, %vm2882_vm3 }
  0x88   : > { %2386 = vmatpush3.bf16.msra.mxu0 %v2659_v36  ;;  %v2120_v36 = vld [vmem:[%s3199_s3] ss:$0 sm:$0xff]  ;;  %vm2739_vm6 = vmpackc.low %vm1142_vm5, %vm2882_vm3 }
  0x89   : > { %2387 = vmatprep.subr.bf16.mxu0 %v2660_v37  ;;  %vm2742_vm8 = vmpackc.low %vm1583_vm7, %vm2882_vm3 }
  0x8a   : > { %2406 = vmatpush3.bf16.msra.mxu1 %v2671_v48 }
  0x8b   : > { %2407 = vmatprep.subr.bf16.mxu1 %v2673_v50 }
  0x8c   : > { %2388 = vmatpush3.bf16.msra.mxu0 %v2660_v37 }
  0x8d   : > { %2389 = vmatprep.subr.bf16.mxu0 %v2661_v38 }
  0x8e   : > { %2408 = vmatpush3.bf16.msra.mxu1 %v2673_v50  ;;  %v2681_v50 = vld [vmem:[#allocation6 + $0x150] sm:$0xff]  }
  0x8f   : > { %2409 = vmatprep.subr.bf16.mxu1 %v2675_v52 }
  0x90   : > { %2390 = vmatpush3.bf16.msra.mxu0 %v2661_v38 }
  0x91   : > { %2391 = vmatprep.subr.bf16.mxu0 %v2662_v39 }
  0x92   : > { %2410 = vmatpush3.bf16.msra.mxu1 %v2675_v52 }
  0x93   : > { %2411 = vmatprep.subr.bf16.mxu1 %v2677_v54 }
  0x94   : > { %2392 = vmatpush3.bf16.msra.mxu0 %v2662_v39  ;;  %v2121_v39 = vld [vmem:[%s3200_s4] ss:$0 sm:$0xff] }
  0x95   : > { %2417 = vmatprep.subr.bf16.mxu0 %v2664_v45 }
  0x96   : > { %2412 = vmatpush3.bf16.msra.mxu1 %v2677_v54 }
  0x97   : > { %2394 = vmatmul.mubr.bf16.vlgmr.msra.gmra.mrb[4].mxu0 %v514_v41  ;;  %2437 = vmatprep.subr.bf16.mxu1 %v3074_v57 }
  0x98   : > { %2418 = vmatpush3.bf16.msra.mxu0 %v2664_v45 }
  0x99   : > { %2419 = vmatprep.subr.bf16.mxu0 %v2666_v47 }
  0x9c   : > { %2420 = vmatpush3.bf16.msra.mxu0 %v2666_v47  ;;  %v2680_v47 = vld [vmem:[#allocation6 + $0x148] sm:$0xff]  }
  0x9d   : > { %2421 = vmatprep.subr.bf16.mxu0 %v2668_v49 }
  0xa0   : > { %2422 = vmatpush3.bf16.msra.mxu0 %v2668_v49  ;;  %v712_v49 = vld [vmem:[#allocation2 + $0x1f] sm:$0x3] }
  0xa1   : > { %2423 = vmatprep.subr.bf16.mxu0 %v2670_v51 }
  0xa4   : > { %2424 = vmatpush3.bf16.msra.mxu0 %v2670_v51 }
  0xa5   : > { %2425 = vmatprep.subr.bf16.mxu0 %v2672_v53 }
  0xa8   : > { %2426 = vmatpush3.bf16.msra.mxu0 %v2672_v53 }
  0xa9   : > { %2427 = vmatprep.subr.bf16.mxu0 %v2674_v55 }
  0xac   : > { %2428 = vmatpush3.bf16.msra.mxu0 %v2674_v55 }
  0xad   : > { %2429 = vmatprep.subr.bf16.mxu0 %v2676_v56 }
  0xb0   : > { %2430 = vmatpush3.bf16.msra.mxu0 %v2676_v56 }
  0xb1   : > { %2431 = vmatprep.subr.bf16.mxu0 %v2678_v58 }
  0xb4   : > { %2432 = vmatpush3.bf16.msra.mxu0 %v2678_v58 }
 0x14a   : > { %v2355_v59 = vpop.f32.mrb[0].mxu0 }
 0x14b   : > { %v2375_v60 = vpop.f32.mrb[0].mxu1  ;;  %v397_v61 = vpop.f32.mrb[1].mxu0 }
 0x14c   : > { %v503_v62 = vadd.f32 %v2375_v60, %v2355_v59  ;;  %v494_v63 = vpop.f32.mrb[1].mxu1  ;;  %v2356_v1 = vpop.f32.mrb[2].mxu0  ;;  %v951_v59 = vld [vmem:[#allocation2 + $0x19] sm:$0xff] }
 0x14d   : > { %v495_v2 = vadd.f32 %v494_v63, %v397_v61  ;;  %v2376_v3 = vpop.f32.mrb[2].mxu1  ;;  %v400_v4 = vpop.f32.mrb[3].mxu0  ;;  %v2682_v61 = vld [vmem:[#allocation6 + $0x158] sm:$0xff]   ;;  %v2685_v63 = vld [vmem:[#allocation6 + $0x170] sm:$0xff]  }
 0x14e   : > { %v497_v5 = vpop.f32.mrb[3].mxu1  ;;  %v2686_v1 = vld [vmem:[#allocation6 + $0x178] sm:$0xff]  }
 0x14f   : > { %v498_v6 = vadd.f32 %v497_v5, %v400_v4  ;;  %v2689_v4 = vld [vmem:[#allocation6 + $0x1c8] sm:$0xff]   ;;  %v2691_v5 = vld [vmem:[#allocation6 + $0x1d0] sm:$0xff]  }
 0x16a   : > { %v2395_v7 = vpop.f32.mrb[4].mxu0 }
 0x16b   : > { %v631_v9 = vadd.f32 %v2395_v7, %v503_v62  ;;  %v614_v10 = vpop.f32.mrb[5].mxu0  ;;  %v2684_v62 = vld [vmem:[#allocation6 + $0x168] sm:$0xff]   ;;  %v2693_v7 = vld [vmem:[#allocation6 + $0x1d8] sm:$0xff]  }
 0x16c   : > { %v629_v11 = vadd.f32 %v614_v10, %v495_v2  ;;  %v2396_v12 = vpop.f32.mrb[6].mxu0  ;;  %v952_v2 = vld [vmem:[#allocation2 + $0x21] sm:$0x3]  ;;  %v2692_v10 = vld [vmem:[#allocation6 + $0x190] sm:$0xff]  }
 0x16d   : > { %v642_v13 = vadd.f32 %v2119_v8, %v631_v9  ;;  %v617_v14 = vpop.f32.mrb[7].mxu0  ;;  %v954_v3 = vpack.c.bf16 %v952_v2, %v951_v59  ;;  %v2695_v9 = vld [vmem:[#allocation6 + $0x1e0] sm:$0xff]   ;;  %v2694_v12 = vld [vmem:[#allocation6 + $0x198] sm:$0xff]  }
 0x16e   : > { %v640_v15 = vadd.f32 %v2119_v8, %v629_v11  ;;  %v630_v16 = vadd.f32 %v617_v14, %v498_v6  ;;  %v2688_v6 = vld [vmem:[#allocation6 + $0x180] sm:$0xff]   ;;  %v2697_v11 = vld [vmem:[#allocation6 + $0x1e8] sm:$0xff]   ;;  %v2149_v59 = vld [vmem:[%s3199_s3 + $0x1] ss:$0 sm:$0xff] }
 0x16f   : > { %v646_v17 = vmax.f32 %v642_v13, 0.0  ;;  %v2699_v13 = vld [vmem:[#allocation6 + $0x1f0] sm:$0xff]   ;;  %v2696_v14 = vld [vmem:[#allocation6 + $0x1a0] sm:$0xff]  }
 0x170   : > { %v644_v19 = vmax.f32 %v640_v15, 0.0  ;;  %v641_v20 = vadd.f32 %v2119_v8, %v630_v16  ;;  %v2690_v8 = vld [vmem:[#allocation6 + $0x188] sm:$0xff]   ;;  %v2701_v15 = vld [vmem:[#allocation6 + $0x1f8] sm:$0xff]  }
 0x171   : > { %v656_v22 = vrot.slane %v646_v17, 1  ;;  %v670_v23 = vrot.slane %v646_v17, 2  ;;  %v2698_v16 = vld [vmem:[#allocation6 + $0x1a8] sm:$0xff]   ;;  %v2700_v17 = vld [vmem:[#allocation6 + $0x1b0] sm:$0xff]  }
 0x172   : > { %v645_v21 = vmax.f32 %v641_v20, 0.0  ;;  %v653_v25 = vrot.slane %v644_v19, 1  ;;  %v667_v26 = vrot.slane %v644_v19, 2 }
 0x174   : > { %v654_v27 = vrot.slane %v645_v21, 1  ;;  %v668_v28 = vrot.slane %v645_v21, 2 }
 0x176   : > { %v655_v29 = vsel %vm652_vm0, %v653_v25, %v654_v27  ;;  %v657_v30 = vsel %vm652_vm0, %v654_v27, %v656_v22  ;;  %v669_v31 = vsel %vm666_vm1, %v667_v26, %v668_v28  ;;  %v671_v32 = vsel %vm666_vm1, %v668_v28, %v670_v23 }
 0x177   : > { %v663_v33 = vmax.f32 %v644_v19, %v655_v29  ;;  %v664_v34 = vmax.f32 %v645_v21, %v657_v30  ;;  %v2702_v19 = vld [vmem:[#allocation6 + $0x1b8] sm:$0xff]  }
 0x179   : > { %v677_v37 = vmax.f32 %v663_v33, %v669_v31  ;;  %v678_v38 = vmax.f32 %v664_v34, %v671_v32  ;;  %v2147_v32 = vld [vmem:[%s3198_s2 + $0x1] ss:$0 sm:$0xff] }
 0x17b   : > { %v687_v40 = vmul.f32 %v2120_v36, %v677_v37  ;;  %v688_v41 = vmul.f32 %v2120_v36, %v678_v38 }
 0x17d   : > { %v697_v43 = vadd.f32 %v2121_v39, %v687_v40  ;;  %v698_v44 = vadd.f32 %v2121_v39, %v688_v41 }
 0x17f   : > { %v704_v45 = vsel %vm701_vm2, %v698_v44, 0.0  ;;  %706 = vst [vmem:[#allocation2 + $0x8] sm:$0xff] %v697_v43  ;;  %v2737_v48 = vpack.c.bf16 %v698_v44, %v697_v43 }
 0x180   : > { %707 = vst [vmem:[#allocation2 + $0x10] sm:$0xff] %v704_v45 }
 0x181   : > { %2738 = vmatprep.mubr.msk.bf16.mxu1 %vm2736_vm4, %v2737_v48 }
 0x182   : > { %2414 = vmatmul.mubr.bf16.vlgmr.msra.gmra.mrb[4].mxu1 %v737_v46 }
 0x183   : > { %2438 = vmatpush3.bf16.msra.mxu1 %v3074_v57  ;;  %v2683_v57 = vld [vmem:[#allocation6 + $0x160] sm:$0xff]  }
 0x184   : > { %2439 = vmatprep.subr.bf16.mxu1 %v2680_v47 }
 0x186   : > { %v709_v51 = vld [vmem:[#allocation2 + $0x7] sm:$0xff] }
 0x187   : > { %v710_v52 = vld [vmem:[#allocation2 + $0xf] sm:$0xff]  ;;  %v711_v53 = vld [vmem:[#allocation2 + $0x17] sm:$0xff]  ;;  %2440 = vmatpush3.bf16.msra.mxu1 %v2680_v47 }
 0x188   : > { %v949_v54 = vld [vmem:[#allocation2 + $0x9] sm:$0xff]  ;;  %v713_v55 = vpack.c.bf16 %v710_v52, %v709_v51  ;;  %v714_v56 = vpack.c.bf16 %v712_v49, %v711_v53  ;;  %v950_v58 = vld [vmem:[#allocation2 + $0x11] sm:$0xff]  ;;  %2441 = vmatprep.subr.bf16.mxu1 %v2681_v50 }
 0x189   : > { %v953_v60 = vpack.c.bf16 %v950_v58, %v949_v54  ;;  %1149 = vst [vmem:[#allocation2 + $0x18] sm:$0xff] %v2881_v0  ;;  %v2687_v0 = vld [vmem:[#allocation6 + $0x1c0] sm:$0xff]  }
 0x18a   : > { %2433 = vmatprep.mubr.bf16.mxu0 %v713_v55  ;;  %2457 = vmatprep.subr.bf16.mxu0 %v2687_v0 }
 0x18b   : > { %2434 = vmatmul.mubr.bf16.vlgmr.msra.gmra.mrb[8].mxu0 %v714_v56  ;;  %2453 = vmatprep.mubr.bf16.mxu1 %v953_v60 }
 0x18c   : > { %2442 = vmatpush3.bf16.msra.mxu1 %v2681_v50  ;;  %2458 = vmatpush3.bf16.msra.mxu0 %v2687_v0 }
 0x18d   : > { %2443 = vmatprep.subr.bf16.mxu1 %v2682_v61  ;;  %2459 = vmatprep.subr.bf16.mxu0 %v2689_v4 }
 0x190   : > { %2444 = vmatpush3.bf16.msra.mxu1 %v2682_v61  ;;  %2460 = vmatpush3.bf16.msra.mxu0 %v2689_v4  ;;  %v3114_v4 = vld [vmem:[#allocation2] sm:$0xff] }
 0x191   : > { %2445 = vmatprep.subr.bf16.mxu1 %v2683_v57  ;;  %2461 = vmatprep.subr.bf16.mxu0 %v2691_v5 }
 0x194   : > { %2446 = vmatpush3.bf16.msra.mxu1 %v2683_v57  ;;  %2462 = vmatpush3.bf16.msra.mxu0 %v2691_v5  ;;  %v2151_v57 = vld [vmem:[%s3200_s4 + $0x1] ss:$0 sm:$0xff] }
 0x195   : > { %2447 = vmatprep.subr.bf16.mxu1 %v2684_v62  ;;  %2463 = vmatprep.subr.bf16.mxu0 %v2693_v7 }
 0x198   : > { %2448 = vmatpush3.bf16.msra.mxu1 %v2684_v62  ;;  %2464 = vmatpush3.bf16.msra.mxu0 %v2693_v7 }
 0x199   : > { %2449 = vmatprep.subr.bf16.mxu1 %v2685_v63  ;;  %2465 = vmatprep.subr.bf16.mxu0 %v2695_v9 }
 0x19c   : > { %2450 = vmatpush3.bf16.msra.mxu1 %v2685_v63  ;;  %2466 = vmatpush3.bf16.msra.mxu0 %v2695_v9  ;;  %v2705_v9 = vld [vmem:[#allocation6 + $0x210] sm:$0xff]  }
 0x19d   : > { %2451 = vmatprep.subr.bf16.mxu1 %v2686_v1  ;;  %2467 = vmatprep.subr.bf16.mxu0 %v2697_v11 }
 0x1a0   : > { %2452 = vmatpush3.bf16.msra.mxu1 %v2686_v1  ;;  %2468 = vmatpush3.bf16.msra.mxu0 %v2697_v11  ;;  %v1176_v1 = vld [vmem:[#allocation2 + $0x20] sm:$0x3] }
 0x1a1   : > { %2477 = vmatprep.subr.bf16.mxu1 %v2688_v6  ;;  %2469 = vmatprep.subr.bf16.mxu0 %v2699_v13  ;;  %v1178_v5 = vpack.c.bf16 %v1176_v1, %v3114_v4 }
 0x1a3   : > { %2454 = vmatmul.mubr.bf16.vlgmr.msra.gmra.mrb[8].mxu1 %v954_v3 }
 0x1a4   : > { %2478 = vmatpush3.bf16.msra.mxu1 %v2688_v6  ;;  %2470 = vmatpush3.bf16.msra.mxu0 %v2699_v13  ;;  %v2704_v6 = vld [vmem:[#allocation6 + $0x208] sm:$0xff]  }
 0x1a5   : > { %2479 = vmatprep.subr.bf16.mxu1 %v2690_v8  ;;  %2471 = vmatprep.subr.bf16.mxu0 %v2701_v15 }
 0x1a8   : > { %2480 = vmatpush3.bf16.msra.mxu1 %v2690_v8  ;;  %2472 = vmatpush3.bf16.msra.mxu0 %v2701_v15  ;;  %v1153_v8 = vld [vmem:[#allocation2 + $0x1f] sm:$0x3] }
 0x1a9   : > { %2481 = vmatprep.subr.bf16.mxu1 %v2692_v10  ;;  %2497 = vmatprep.subr.bf16.mxu0 %v3097_v18 }
 0x1ac   : > { %2482 = vmatpush3.bf16.msra.mxu1 %v2692_v10 }
 0x1ad   : > { %2483 = vmatprep.subr.bf16.mxu1 %v2694_v12 }
 0x1b0   : > { %2484 = vmatpush3.bf16.msra.mxu1 %v2694_v12 }
 0x1b1   : > { %2485 = vmatprep.subr.bf16.mxu1 %v2696_v14 }
 0x1b4   : > { %2486 = vmatpush3.bf16.msra.mxu1 %v2696_v14 }
 0x1b5   : > { %2487 = vmatprep.subr.bf16.mxu1 %v2698_v16 }
 0x1b8   : > { %2488 = vmatpush3.bf16.msra.mxu1 %v2698_v16 }
 0x1b9   : > { %2489 = vmatprep.subr.bf16.mxu1 %v2700_v17 }
 0x1bc   : > { %2490 = vmatpush3.bf16.msra.mxu1 %v2700_v17  ;;  %v1392_v17 = vld [vmem:[#allocation2 + $0x19] sm:$0xff] }
 0x1bd   : > { %2491 = vmatprep.subr.bf16.mxu1 %v2702_v19 }
 0x1c0   : > { %2492 = vmatpush3.bf16.msra.mxu1 %v2702_v19 }
 0x255   : > { %v2415_v20 = vpop.f32.mrb[4].mxu1 }
 0x256   : > { %v837_v21 = vpop.f32.mrb[5].mxu1 }
 0x257   : > { %v2416_v22 = vpop.f32.mrb[6].mxu1 }
 0x258   : > { %v840_v23 = vpop.f32.mrb[7].mxu1  ;;  %v2709_v22 = vld [vmem:[#allocation6 + $0x230] sm:$0xff]  }
 0x25e   : > { %v2435_v24 = vpop.f32.mrb[8].mxu0 }
 0x25f   : > { %v943_v25 = vadd.f32 %v2435_v24, %v2415_v20  ;;  %v934_v26 = vpop.f32.mrb[9].mxu0  ;;  %v2706_v20 = vld [vmem:[#allocation6 + $0x218] sm:$0xff]  }
 0x260   : > { %v935_v27 = vadd.f32 %v934_v26, %v837_v21  ;;  %v2436_v28 = vpop.f32.mrb[10].mxu0  ;;  %v2708_v21 = vld [vmem:[#allocation6 + $0x228] sm:$0xff]   ;;  %v1393_v24 = vld [vmem:[#allocation2 + $0x21] sm:$0x3]  ;;  %v2711_v26 = vld [vmem:[#allocation6 + $0x280] sm:$0xff]  }
 0x261   : > { %v937_v29 = vpop.f32.mrb[11].mxu0  ;;  %2517 = vmatprep.subr.bf16.mxu1 %v2711_v26  ;;  %v2715_v28 = vld [vmem:[#allocation6 + $0x290] sm:$0xff]  }
 0x262   : > { %v938_v30 = vadd.f32 %v937_v29, %v840_v23  ;;  %v2710_v23 = vld [vmem:[#allocation6 + $0x238] sm:$0xff]   ;;  %v2712_v29 = vld [vmem:[#allocation6 + $0x240] sm:$0xff]  }
 0x276   : > { %v2455_v31 = vpop.f32.mrb[8].mxu1 }
 0x277   : > { %v1071_v33 = vadd.f32 %v2455_v31, %v943_v25  ;;  %v1054_v34 = vpop.f32.mrb[9].mxu1  ;;  %v1395_v25 = vpack.c.bf16 %v1393_v24, %v1392_v17  ;;  %v2714_v31 = vld [vmem:[#allocation6 + $0x248] sm:$0xff]   ;;  %v1617_v24 = vld [vmem:[#allocation2 + $0x20] sm:$0x3] }
 0x278   : > { %v1069_v36 = vadd.f32 %v1054_v34, %v935_v27  ;;  %v2456_v37 = vpop.f32.mrb[10].mxu1  ;;  %v2713_v27 = vld [vmem:[#allocation6 + $0x288] sm:$0xff]  }
 0x279   : > { %v1083_v38 = vadd.f32 %v2147_v32, %v1071_v33  ;;  %v1057_v39 = vpop.f32.mrb[11].mxu1  ;;  %v2716_v33 = vld [vmem:[#allocation6 + $0x250] sm:$0xff]   ;;  %v2721_v34 = vld [vmem:[#allocation6 + $0x2a8] sm:$0xff]  }
 0x27a   : > { %v1081_v40 = vadd.f32 %v2147_v32, %v1069_v36  ;;  %v1070_v41 = vadd.f32 %v1057_v39, %v938_v30  ;;  %v2717_v30 = vld [vmem:[#allocation6 + $0x298] sm:$0xff]   ;;  %v2723_v37 = vld [vmem:[#allocation6 + $0x2b0] sm:$0xff]  }
 0x27b   : > { %v1087_v42 = vmax.f32 %v1083_v38, 0.0  ;;  %v2718_v36 = vld [vmem:[#allocation6 + $0x258] sm:$0xff]   ;;  %v2720_v38 = vld [vmem:[#allocation6 + $0x260] sm:$0xff]  }
 0x27c   : > { %v1085_v43 = vmax.f32 %v1081_v40, 0.0  ;;  %v1082_v44 = vadd.f32 %v2147_v32, %v1070_v41  ;;  %v2719_v32 = vld [vmem:[#allocation6 + $0x2a0] sm:$0xff]   ;;  %v2725_v39 = vld [vmem:[#allocation6 + $0x2b8] sm:$0xff]   ;;  %v2722_v40 = vld [vmem:[#allocation6 + $0x268] sm:$0xff]  }
 0x27d   : > { %v1096_v46 = vrot.slane %v1087_v42, 1  ;;  %v1109_v47 = vrot.slane %v1087_v42, 2  ;;  %v2724_v41 = vld [vmem:[#allocation6 + $0x270] sm:$0xff]   ;;  %v2727_v42 = vld [vmem:[#allocation6 + $0x2c0] sm:$0xff]  }
 0x27e   : > { %v1086_v45 = vmax.f32 %v1082_v44, 0.0  ;;  %v1093_v48 = vrot.slane %v1085_v43, 1  ;;  %v1106_v49 = vrot.slane %v1085_v43, 2 }
 0x280   : > { %v1094_v50 = vrot.slane %v1086_v45, 1  ;;  %v1107_v51 = vrot.slane %v1086_v45, 2 }
 0x282   : > { %v1095_v52 = vsel %vm652_vm0, %v1093_v48, %v1094_v50  ;;  %v1097_v53 = vsel %vm652_vm0, %v1094_v50, %v1096_v46  ;;  %v1108_v54 = vsel %vm666_vm1, %v1106_v49, %v1107_v51  ;;  %v1110_v55 = vsel %vm666_vm1, %v1107_v51, %v1109_v47 }
 0x283   : > { %v1103_v56 = vmax.f32 %v1085_v43, %v1095_v52  ;;  %v1104_v58 = vmax.f32 %v1086_v45, %v1097_v53  ;;  %v2726_v43 = vld [vmem:[#allocation6 + $0x278] sm:$0xff]  }
 0x285   : > { %v1116_v60 = vmax.f32 %v1103_v56, %v1108_v54  ;;  %v1117_v61 = vmax.f32 %v1104_v58, %v1110_v55  ;;  %v2177_v56 = vld [vmem:[%s3198_s2 + $0x2] ss:$0 sm:$0xff] }
 0x287   : > { %v1127_v62 = vmul.f32 %v2149_v59, %v1116_v60  ;;  %v1128_v63 = vmul.f32 %v2149_v59, %v1117_v61 }
 0x289   : > { %v1138_v2 = vadd.f32 %v2151_v57, %v1127_v62  ;;  %v1139_v3 = vadd.f32 %v2151_v57, %v1128_v63 }
 0x28b   : > { %v1145_v0 = vsel %vm1142_vm5, %v1139_v3, 0.0  ;;  %1147 = vst [vmem:[#allocation2 + $0x8] sm:$0xff] %v1138_v2  ;;  %v2740_v7 = vpack.c.bf16 %v1139_v3, %v1138_v2 }
 0x28c   : > { %1148 = vst [vmem:[#allocation2 + $0x10] sm:$0xff] %v1145_v0 }
 0x28d   : > { %2741 = vmatprep.mubr.msk.bf16.mxu0 %vm2739_vm6, %v2740_v7 }
 0x28e   : > { %2474 = vmatmul.mubr.bf16.vlgmr.msra.gmra.mrb[12].mxu0 %v1178_v5 }
 0x28f   : > { %2498 = vmatpush3.bf16.msra.mxu0 %v3097_v18  ;;  %v2707_v18 = vld [vmem:[#allocation6 + $0x220] sm:$0xff]  }
 0x290   : > { %2499 = vmatprep.subr.bf16.mxu0 %v2704_v6 }
 0x292   : > { %v1150_v10 = vld [vmem:[#allocation2 + $0x7] sm:$0xff] }
 0x293   : > { %v1151_v11 = vld [vmem:[#allocation2 + $0xf] sm:$0xff]  ;;  %v1152_v12 = vld [vmem:[#allocation2 + $0x17] sm:$0xff]  ;;  %2500 = vmatpush3.bf16.msra.mxu0 %v2704_v6 }
 0x294   : > { %v1390_v13 = vld [vmem:[#allocation2 + $0x9] sm:$0xff]  ;;  %v1154_v14 = vpack.c.bf16 %v1151_v11, %v1150_v10  ;;  %v1155_v15 = vpack.c.bf16 %v1153_v8, %v1152_v12  ;;  %v1391_v16 = vld [vmem:[#allocation2 + $0x11] sm:$0xff]  ;;  %2501 = vmatprep.subr.bf16.mxu0 %v2705_v9 }
 0x295   : > { %v1394_v19 = vpack.c.bf16 %v1391_v16, %v1390_v13  ;;  %1590 = vst [vmem:[#allocation2 + $0x18] sm:$0xff] %v3114_v4 }
 0x296   : > { %2493 = vmatprep.mubr.bf16.mxu1 %v1154_v14 }
 0x297   : > { %2494 = vmatmul.mubr.bf16.vlgmr.msra.gmra.mrb[12].mxu1 %v1155_v15  ;;  %2513 = vmatprep.mubr.bf16.mxu0 %v1394_v19  ;;  %v2179_v19 = vld [vmem:[%s3199_s3 + $0x2] ss:$0 sm:$0xff] }
 0x298   : > { %2502 = vmatpush3.bf16.msra.mxu0 %v2705_v9  ;;  %2518 = vmatpush3.bf16.msra.mxu1 %v2711_v26 }
 0x299   : > { %2503 = vmatprep.subr.bf16.mxu0 %v2706_v20  ;;  %2519 = vmatprep.subr.bf16.mxu1 %v2713_v27 }
 0x29c   : > { %2504 = vmatpush3.bf16.msra.mxu0 %v2706_v20  ;;  %2520 = vmatpush3.bf16.msra.mxu1 %v2713_v27 }
 0x29d   : > { %2505 = vmatprep.subr.bf16.mxu0 %v2707_v18  ;;  %2521 = vmatprep.subr.bf16.mxu1 %v2715_v28 }
 0x2a0   : > { %2506 = vmatpush3.bf16.msra.mxu0 %v2707_v18  ;;  %2522 = vmatpush3.bf16.msra.mxu1 %v2715_v28  ;;  %v1619_v28 = vpack.c.bf16 %v1617_v24, %v3114_v4 }
 0x2a1   : > { %2507 = vmatprep.subr.bf16.mxu0 %v2708_v21  ;;  %2523 = vmatprep.subr.bf16.mxu1 %v2717_v30 }
 0x2a4   : > { %2508 = vmatpush3.bf16.msra.mxu0 %v2708_v21  ;;  %2524 = vmatpush3.bf16.msra.mxu1 %v2717_v30  ;;  %v2181_v21 = vld [vmem:[%s3200_s4 + $0x2] ss:$0 sm:$0xff] }
 0x2a5   : > { %2509 = vmatprep.subr.bf16.mxu0 %v2709_v22  ;;  %2525 = vmatprep.subr.bf16.mxu1 %v2719_v32 }
 0x2a8   : > { %2510 = vmatpush3.bf16.msra.mxu0 %v2709_v22  ;;  %2526 = vmatpush3.bf16.msra.mxu1 %v2719_v32  ;;  %v2729_v32 = vld [vmem:[#allocation6 + $0x2d0] sm:$0xff]  }
 0x2a9   : > { %2511 = vmatprep.subr.bf16.mxu0 %v2710_v23  ;;  %2527 = vmatprep.subr.bf16.mxu1 %v2721_v34 }
 0x2ac   : > { %2512 = vmatpush3.bf16.msra.mxu0 %v2710_v23  ;;  %2528 = vmatpush3.bf16.msra.mxu1 %v2721_v34 }
 0x2ad   : > { %2537 = vmatprep.subr.bf16.mxu0 %v2712_v29  ;;  %2529 = vmatprep.subr.bf16.mxu1 %v2723_v37 }
 0x2af   : > { %2514 = vmatmul.mubr.bf16.vlgmr.msra.gmra.mrb[16].mxu0 %v1395_v25 }
 0x2b0   : > { %2538 = vmatpush3.bf16.msra.mxu0 %v2712_v29  ;;  %2530 = vmatpush3.bf16.msra.mxu1 %v2723_v37  ;;  %v2728_v29 = vld [vmem:[#allocation6 + $0x2c8] sm:$0xff]  }
 0x2b1   : > { %2539 = vmatprep.subr.bf16.mxu0 %v2714_v31  ;;  %2531 = vmatprep.subr.bf16.mxu1 %v2725_v39 }
 0x2b4   : > { %2540 = vmatpush3.bf16.msra.mxu0 %v2714_v31  ;;  %2532 = vmatpush3.bf16.msra.mxu1 %v2725_v39  ;;  %v1594_v31 = vld [vmem:[#allocation2 + $0x1f] sm:$0x3] }
 0x2b5   : > { %2541 = vmatprep.subr.bf16.mxu0 %v2716_v33  ;;  %2557 = vmatprep.subr.bf16.mxu1 %v2727_v42 }
 0x2b8   : > { %2542 = vmatpush3.bf16.msra.mxu0 %v2716_v33 }
 0x2b9   : > { %2543 = vmatprep.subr.bf16.mxu0 %v2718_v36 }
 0x2bc   : > { %2544 = vmatpush3.bf16.msra.mxu0 %v2718_v36 }
 0x2bd   : > { %2545 = vmatprep.subr.bf16.mxu0 %v2720_v38 }
 0x2c0   : > { %2546 = vmatpush3.bf16.msra.mxu0 %v2720_v38 }
 0x2c1   : > { %2547 = vmatprep.subr.bf16.mxu0 %v2722_v40 }
 0x2c4   : > { %2548 = vmatpush3.bf16.msra.mxu0 %v2722_v40  ;;  %v2730_v40 = vld [vmem:[#allocation6 + $0x2d8] sm:$0xff]  }
 0x2c5   : > { %2549 = vmatprep.subr.bf16.mxu0 %v2724_v41 }
 0x2c8   : > { %2550 = vmatpush3.bf16.msra.mxu0 %v2724_v41  ;;  %v2731_v41 = vld [vmem:[#allocation6 + $0x2e0] sm:$0xff]  }
 0x2c9   : > { %2551 = vmatprep.subr.bf16.mxu0 %v2726_v43 }
 0x2cc   : > { %2552 = vmatpush3.bf16.msra.mxu0 %v2726_v43  ;;  %v2733_v43 = vld [vmem:[#allocation6 + $0x2f0] sm:$0xff]  }
 0x361   : > { %v2475_v44 = vpop.f32.mrb[12].mxu0 }
 0x362   : > { %v1278_v45 = vpop.f32.mrb[13].mxu0 }
 0x363   : > { %v2476_v46 = vpop.f32.mrb[14].mxu0 }
 0x364   : > { %v1281_v47 = vpop.f32.mrb[15].mxu0  ;;  %v1830_v46 = vld [vmem:[#allocation2 + $0x21] sm:$0x3] }
 0x36a   : > { %v2495_v48 = vpop.f32.mrb[12].mxu1 }
 0x36b   : > { %v1384_v49 = vadd.f32 %v2495_v48, %v2475_v44  ;;  %v1375_v50 = vpop.f32.mrb[13].mxu1  ;;  %v2734_v44 = vld [vmem:[#allocation6 + $0x2f8] sm:$0xff]  }
 0x36c   : > { %v1376_v51 = vadd.f32 %v1375_v50, %v1278_v45  ;;  %v2496_v52 = vpop.f32.mrb[14].mxu1  ;;  %v1829_v45 = vld [vmem:[#allocation2 + $0x19] sm:$0xff] }
 0x36d   : > { %v1378_v53 = vpop.f32.mrb[15].mxu1 }
 0x36e   : > { %v1379_v54 = vadd.f32 %v1378_v53, %v1281_v47  ;;  %v1832_v47 = vpack.c.bf16 %v1830_v46, %v1829_v45 }
 0x382   : > { %v2515_v55 = vpop.f32.mrb[16].mxu0 }
 0x383   : > { %v1512_v58 = vadd.f32 %v2515_v55, %v1384_v49  ;;  %v1495_v59 = vpop.f32.mrb[17].mxu0 }
 0x384   : > { %v1510_v60 = vadd.f32 %v1495_v59, %v1376_v51  ;;  %v2516_v61 = vpop.f32.mrb[18].mxu0 }
 0x385   : > { %v1524_v57 = vadd.f32 %v2177_v56, %v1512_v58  ;;  %v1498_v62 = vpop.f32.mrb[19].mxu0  ;;  %v2207_v61 = vld [vmem:[%s3198_s2 + $0x3] ss:$0 sm:$0xff] }
 0x386   : > { %v1522_v63 = vadd.f32 %v2177_v56, %v1510_v60  ;;  %v1511_v1 = vadd.f32 %v1498_v62, %v1379_v54 }
 0x387   : > { %v1528_v2 = vmax.f32 %v1524_v57, 0.0 }
 0x388   : > { %v1526_v3 = vmax.f32 %v1522_v63, 0.0  ;;  %v1523_v0 = vadd.f32 %v2177_v56, %v1511_v1 }
 0x389   : > { %v1537_v6 = vrot.slane %v1528_v2, 1  ;;  %v1550_v7 = vrot.slane %v1528_v2, 2 }
 0x38a   : > { %v1527_v5 = vmax.f32 %v1523_v0, 0.0  ;;  %v1534_v8 = vrot.slane %v1526_v3, 1  ;;  %v1547_v9 = vrot.slane %v1526_v3, 2 }
 0x38c   : > { %v1535_v10 = vrot.slane %v1527_v5, 1  ;;  %v1548_v11 = vrot.slane %v1527_v5, 2 }
 0x38e   : > { %v1536_v12 = vsel %vm652_vm0, %v1534_v8, %v1535_v10  ;;  %v1538_v13 = vsel %vm652_vm0, %v1535_v10, %v1537_v6  ;;  %v1549_v14 = vsel %vm666_vm1, %v1547_v9, %v1548_v11  ;;  %v1551_v15 = vsel %vm666_vm1, %v1548_v11, %v1550_v7 }
 0x38f   : > { %v1544_v16 = vmax.f32 %v1526_v3, %v1536_v12  ;;  %v1545_v17 = vmax.f32 %v1527_v5, %v1538_v13  ;;  %v2209_v13 = vld [vmem:[%s3199_s3 + $0x3] ss:$0 sm:$0xff] }
 0x391   : > { %v1557_v20 = vmax.f32 %v1544_v16, %v1549_v14  ;;  %v1558_v18 = vmax.f32 %v1545_v17, %v1551_v15  ;;  %v2211_v15 = vld [vmem:[%s3200_s4 + $0x3] ss:$0 sm:$0xff] }
 0x393   : > { %v1568_v22 = vmul.f32 %v2179_v19, %v1557_v20  ;;  %v1569_v23 = vmul.f32 %v2179_v19, %v1558_v18 }
 0x395   : > { %v1579_v25 = vadd.f32 %v2181_v21, %v1568_v22  ;;  %v1580_v26 = vadd.f32 %v2181_v21, %v1569_v23 }
 0x397   : > { %v1586_v27 = vsel %vm1583_vm7, %v1580_v26, 0.0  ;;  %1588 = vst [vmem:[#allocation2 + $0x8] sm:$0xff] %v1579_v25  ;;  %v2743_v30 = vpack.c.bf16 %v1580_v26, %v1579_v25 }
 0x398   : > { %1589 = vst [vmem:[#allocation2 + $0x10] sm:$0xff] %v1586_v27 }
 0x399   : > { %2744 = vmatprep.mubr.msk.bf16.mxu1 %vm2742_vm8, %v2743_v30 }
 0x39a   : > { %2534 = vmatmul.mubr.bf16.vlgmr.msra.gmra.mrb[16].mxu1 %v1619_v28 }
 0x39b   : > { %2558 = vmatpush3.bf16.msra.mxu1 %v2727_v42  ;;  %v2732_v42 = vld [vmem:[#allocation6 + $0x2e8] sm:$0xff]  }
 0x39c   : > { %2559 = vmatprep.subr.bf16.mxu1 %v2728_v29 }
 0x39e   : > { %v1591_v33 = vld [vmem:[#allocation2 + $0x7] sm:$0xff] }
 0x39f   : > { %v1592_v35 = vld [vmem:[#allocation2 + $0xf] sm:$0xff]  ;;  %v1593_v34 = vld [vmem:[#allocation2 + $0x17] sm:$0xff]  ;;  %2560 = vmatpush3.bf16.msra.mxu1 %v2728_v29 }
 0x3a0   : > { %v1827_v36 = vld [vmem:[#allocation2 + $0x9] sm:$0xff]  ;;  %v1595_v37 = vpack.c.bf16 %v1592_v35, %v1591_v33  ;;  %v1596_v38 = vpack.c.bf16 %v1594_v31, %v1593_v34  ;;  %v1828_v39 = vld [vmem:[#allocation2 + $0x11] sm:$0xff]  ;;  %2561 = vmatprep.subr.bf16.mxu1 %v2729_v32 }
 0x3a1   : > { %v1831_v4 = vpack.c.bf16 %v1828_v39, %v1827_v36 }
 0x3a2   : > { %2553 = vmatprep.mubr.bf16.mxu0 %v1595_v37 }
 0x3a3   : > { %2554 = vmatmul.mubr.bf16.vlgmr.msra.gmra.mrb[20].mxu0 %v1596_v38  ;;  %2573 = vmatprep.mubr.bf16.mxu1 %v1831_v4 }
 0x3a4   : > { %2562 = vmatpush3.bf16.msra.mxu1 %v2729_v32 }
 0x3a5   : > { %2563 = vmatprep.subr.bf16.mxu1 %v2730_v40 }
 0x3a8   : > { %2564 = vmatpush3.bf16.msra.mxu1 %v2730_v40 }
 0x3a9   : > { %2565 = vmatprep.subr.bf16.mxu1 %v2731_v41 }
 0x3ac   : > { %2566 = vmatpush3.bf16.msra.mxu1 %v2731_v41 }
 0x3ad   : > { %2567 = vmatprep.subr.bf16.mxu1 %v2732_v42 }
 0x3b0   : > { %2568 = vmatpush3.bf16.msra.mxu1 %v2732_v42 }
 0x3b1   : > { %2569 = vmatprep.subr.bf16.mxu1 %v2733_v43 }
 0x3b4   : > { %2570 = vmatpush3.bf16.msra.mxu1 %v2733_v43 }
 0x3b5   : > { %2571 = vmatprep.subr.bf16.mxu1 %v2734_v44 }
 0x3b8   : > { %2572 = vmatpush3.bf16.msra.mxu1 %v2734_v44 }
 0x3bb   : > { %2574 = vmatmul.mubr.bf16.vlgmr.msra.gmra.mrb[20].mxu1 %v1832_v47 }
 0x46d   : > { %v2535_v48 = vpop.f32.mrb[16].mxu1 }
 0x46e   : > { %v1719_v49 = vpop.f32.mrb[17].mxu1 }
 0x46f   : > { %v2536_v50 = vpop.f32.mrb[18].mxu1 }
 0x470   : > { %v1722_v51 = vpop.f32.mrb[19].mxu1 }
 0x476   : > { %v2555_v52 = vpop.f32.mrb[20].mxu0 }
 0x477   : > { %v1814_v53 = vpop.f32.mrb[21].mxu0 }
 0x478   : > { %v1815_v54 = vadd.f32 %v1814_v53, %v1719_v49  ;;  %v2556_v55 = vpop.f32.mrb[22].mxu0 }
 0x479   : > { %v1817_v56 = vpop.f32.mrb[23].mxu0 }
 0x47a   : > { %v1818_v58 = vadd.f32 %v1817_v56, %v1722_v51 }
 0x48e   : > { %v2575_v59 = vpop.f32.mrb[20].mxu1 }
 0x48f   : > { %v1932_v60 = vpop.f32.mrb[21].mxu1 }
 0x490   : > { %v1945_v57 = vadd.f32 %v1932_v60, %v1815_v54  ;;  %v2576_v62 = vpop.f32.mrb[22].mxu1 }
 0x491   : > { %v1935_v63 = vpop.f32.mrb[23].mxu1 }
 0x492   : > { %v1955_v1 = vadd.f32 %v2207_v61, %v1945_v57  ;;  %v1946_v2 = vadd.f32 %v1935_v63, %v1818_v58 }
 0x494   : > { %v1957_v3 = vmax.f32 %v1955_v1, 0.0  ;;  %v1956_v0 = vadd.f32 %v2207_v61, %v1946_v2 }
 0x496   : > { %v1958_v5 = vmax.f32 %v1956_v0, 0.0  ;;  %v1961_v6 = vrot.slane %v1957_v3, 1  ;;  %v1966_v7 = vrot.slane %v1957_v3, 2 }
 0x498   : > { %v1962_v8 = vrot.slane %v1958_v5, 1  ;;  %v1967_v9 = vrot.slane %v1958_v5, 2 }
 0x49a   : > { %v1963_v10 = vsel %vm652_vm0, %v1961_v6, %v1962_v8  ;;  %v1968_v11 = vsel %vm666_vm1, %v1966_v7, %v1967_v9 }
 0x49b   : > { %v1965_v12 = vmax.f32 %v1957_v3, %v1963_v10 }
 0x49d   : > { %v1970_v14 = vmax.f32 %v1965_v12, %v1968_v11 }
 0x49f   : > { %v1979_v16 = vmul.f32 %v2209_v13, %v1970_v14 }
 0x4a1   : > { %v1988_v17 = vadd.f32 %v2211_v15, %v1979_v16 }
 0x4a3   : > { %1989 = vst [vmem:[%s257_s17] sm:$0xff] %v1988_v17 }
 0x4a4   : > { %2816 = shalt.err (!%p2813_p7)
}
 0x4a5   : > { %s2817_s23 = scalar_lea.hbm %s3152_s24, 128  ;;  %s2821_s29 = scalar_lea.hbm %s3201_s5, 256 }
 0x4a6   : > { %p2818_p9 = scmp.ne.s32.totalorder %s3152_s24, %s2817_s23  ;;  %p2822_p5 = scmp.lt.u32.totalorder %s3152_s24, %s3201_s5 }
 0x4a7   : > { %p2823_p11 = scmp.lt.u32.totalorder %s2821_s29, %s2817_s23  ;;  %p2825_p4 = scmp.lt.u32.totalorder %s2817_s23, %s3152_s24 }
 0x4a8   : > { %p2819_p2 = pnand %p2818_p9, %p3005_p12 }
 0x4a9   : > { %p2824_p1 = por %p2823_p11, %p2822_p5 }
 0x4aa   : > { %p2820_p0 = pneg %p2819_p2 }
 0x4ab   : > { %p2826_p6 = por %p2825_p4, %p2824_p1 }
 0x4ad   : > { %p2827_p8 = pnand %p2826_p6, %p2820_p0 }
 0x4af   : > { %2830 = shalt.err (!%p2827_p8)
}
 0x4b0   : > { %2583 = dma.vmem_to_hbm [thread:$0]  (%p3005_p12), %s3154_s27, 128, %s3152_s24, %s1991_s26  }
 0x4b1 PF: > { %s2016_s16 = sand.u32 1, %s2861_s18   ;;  %p3216_p10 = scmp.ne.s32.totalorder %s3206_s25, 0 }
 0x4b2   : > { %p3217_p13 = scmp.ge.s32.totalorder %s2873_s21, 2  ;;  %s2017_s17 = scalar_lea.sflag [#allocation5], %s2016_s16 }
 0x4b4   : > { %p2594_p3 = pnand %p3217_p13, %p3216_p10 }
 0x4b6   : > { %2856 = dma.done.wait (!%p2594_p3), %s2017_s17, 128  }
 0x4b7   : > { %2858 = vsyncadd (!%p2594_p3), %s2017_s17, 4294967168  ;;  %p19_p7 = scmp.ge.s32.totalorder %s2970_s30, 4   ;;  %s3218_s18 = smov %s2865_s19 }
 0x4b8   : > { %s3219_s19 = smov %s2869_s20  ;;  %s3220_s20 = smov %s3001_s8 }
 0x4b9   : > { %s3221_s21 = smov %s2970_s30  ;;  %21 = sbr.rel (!%p19_p7) target bundleno = 6 (0x6), region = 109 }
 0x4c0   :  { %2022 = vsyncpa [#allocation4], 1 }
 0x4c1   :  { %2024 = vsyncpa [#allocation4 + $0x1], 1 }
 0x4c2   :  { %2025 = vsyncpa [#allocation7], 1 }
 0x4c3   :  { %2026 = vsyncpa [#allocation5], 1 }
 0x4c4   :  { %2028 = vsyncpa [#allocation5 + $0x1], 1 }

</bundles_post_ra>
